<compile_context>
chip_gen: v7x
topology: tpu7x:2x2x1
jax: 0.10.0
libtpu: 0.0.40
codegen_flags: <defaults>
</compile_context>

<pallas_src>
import numpy as np
import jax
import jax.numpy as jnp
from jax.experimental import pallas as pl
from jax.experimental.pallas import tpu as pltpu

EPS = 1e-5
LANE = 128                     # channels zero-padded to the TPU lane width
ACT_DTYPE = jnp.bfloat16       # activations carried between layers


# ----------------------------- helpers --------------------------------------

def _round_up(x, m):
    return ((x + m - 1) // m) * m


def _cpad(c):
    return _round_up(c, LANE)


_TPU_VMEM_CAP = None


def _vmem_cap():
    global _TPU_VMEM_CAP
    if _TPU_VMEM_CAP is None:
        try:
            _TPU_VMEM_CAP = int(pltpu.get_tpu_info().vmem_capacity_bytes)
        except Exception:
            _TPU_VMEM_CAP = 64 * 1024 * 1024      # v7x-safe assumption
    return _TPU_VMEM_CAP


def _cparams(block_bytes):
    """1-D parallel grid + explicit VMEM limit (2x for double buffering)."""
    cap = _vmem_cap()
    limit = int(min(max(2 * block_bytes + (8 << 20), 24 << 20), cap * 3 // 4))
    return pltpu.CompilerParams(dimension_semantics=("parallel",),
                                vmem_limit_bytes=limit)


def _pick_rows(m, cap=1024):
    """Largest divisor of m (multiple of 8) that is <= cap, else m."""
    if m <= cap:
        return m
    t = cap - cap % 8
    while t >= 8:
        if m % t == 0:
            return t
        t -= 8
    return m


def _choose_th(ho, wpp, kh, cin_p, cout_p):
    """Largest output-H band (divisor of Ho) whose pass-1 blocks fit a VMEM
    budget derived from the device's capacity."""
    budget = max(2 << 20, _vmem_cap() // 12)
    best = 1
    for th in range(1, ho + 1):
        if ho % th:
            continue
        in_rows = (th + kh - 1) * wpp + 8
        bytes_ = in_rows * cin_p * 2 + 2 * th * wpp * cout_p * 4
        if bytes_ <= budget:
            best = th
    return best


# ----------------------------- Pallas kernels -------------------------------

def _make_conv_stats_kernel(offsets, out_rows):
    """Pass 1: multi-tap conv (bf16 x bf16 -> f32 MXU) on a band of the padded
    activation plus masked per-channel sum / sum-of-squares (two-pass BN).
    Each tap is a static row-shifted slice of the flattened band; the W padding
    is a multiple of 8 so the dh component of every offset is sublane aligned.
    Statistics are computed with a ones-row matmul (MXU) using a precomputed
    valid-row mask, keeping the VPU/XLU slots free."""
    def kernel(x_ref, w_ref, m_ref, y_ref, s_ref):
        acc = None
        for t, off in enumerate(offsets):
            slab = x_ref[0, pl.ds(off, out_rows), :]        # bf16
            contrib = jnp.dot(slab, w_ref[t],
                              preferred_element_type=jnp.float32)
            acc = contrib if acc is None else acc + contrib
        y_ref[0] = acc                                       # f32 conv output
        m = m_ref[...]                                       # (8, out_rows) f32
        s_ref[0, 0] = jnp.dot(m, acc, preferred_element_type=jnp.float32)
        s_ref[0, 1] = jnp.dot(m, acc * acc, preferred_element_type=jnp.float32)
    return kernel


def _make_band_epilogue_kernel(th, wpp, wo, relu, has_res):
    """Pass 2: BN affine + ReLU + residual + W-trim; lane-dense bf16 store in
    the next layer's natural NHWC layout (no wrapper-side trim copy)."""
    def kernel(*refs):
        if has_res:
            y_ref, sc_ref, sh_ref, r_ref, o_ref = refs
        else:
            y_ref, sc_ref, sh_ref, o_ref = refs
        z = y_ref[0] * sc_ref[...] + sh_ref[...]             # (R, C) f32
        if relu:
            z = jnp.maximum(z, 0.0)
        # tile-aligned regrouping (wpp % 8 == 0) then drop the padded columns
        z = z.reshape(th, wpp, z.shape[-1])[:, :wo, :]
        if has_res:
            z = z + r_ref[0].astype(jnp.float32)
        o_ref[0] = z.astype(o_ref.dtype)
    return kernel


def _make_affine_kernel(relu):
    """Tiled per-channel affine (+ReLU) on clean (M, C) activations."""
    def kernel(x_ref, sc_ref, sh_ref, o_ref):
        z = x_ref[...].astype(jnp.float32) * sc_ref[...] + sh_ref[...]
        if relu:
            z = jnp.maximum(z, 0.0)
        o_ref[...] = z.astype(o_ref.dtype)
    return kernel


def _stats_kernel(x_ref, m_ref, s_ref):
    """Tiled partial BN statistics (fallback when a feature tap splits the
    conv/BN fusion and fresh statistics are needed)."""
    x = x_ref[...].astype(jnp.float32)
    m = m_ref[...]
    s_ref[0, 0] = jnp.dot(m, x, preferred_element_type=jnp.float32)
    s_ref[0, 1] = jnp.dot(m, x * x, preferred_element_type=jnp.float32)


_BLUR_FILT = tuple(float(v) for v in
                   (np.outer([1., 2., 1.], [1., 2., 1.]) / 16.0).reshape(-1))


def _blur_kernel(p_ref, o_ref):
    """Antialias blur: 9-tap depthwise MAC on lane-dense (9, TM, C) slabs."""
    acc = p_ref[0].astype(jnp.float32) * _BLUR_FILT[0]
    for t in range(1, 9):
        acc = acc + p_ref[t].astype(jnp.float32) * _BLUR_FILT[t]
    o_ref[...] = acc.astype(o_ref.dtype)


# ----------------------------- pallas_call wrappers --------------------------

def _conv_pass1_call(x_bands, w, mask_np, offsets, out_rows):
    b, in_rows, k = x_bands.shape
    t, _, cout = w.shape
    est = (in_rows * k * 2 + t * k * cout * 2 + 8 * out_rows * 4
           + out_rows * cout * 4 + 16 * cout * 4)
    y, stats = pl.pallas_call(
        _make_conv_stats_kernel(offsets, out_rows),
        grid=(b,),
        in_specs=[pl.BlockSpec((1, in_rows, k), lambda i: (i, 0, 0)),
                  pl.BlockSpec((t, k, cout), lambda i: (0, 0, 0)),
                  pl.BlockSpec((8, out_rows), lambda i: (0, 0))],
        out_specs=(pl.BlockSpec((1, out_rows, cout), lambda i: (i, 0, 0)),
                   pl.BlockSpec((1, 2, 8, cout), lambda i: (i, 0, 0, 0))),
        out_shape=(jax.ShapeDtypeStruct((b, out_rows, cout), jnp.float32),
                   jax.ShapeDtypeStruct((b, 2, 8, cout), jnp.float32)),
        compiler_params=_cparams(est),
    )(x_bands, w, jnp.asarray(mask_np))
    return y, stats


def conv3_pass1(x_pad, w):
    """3x3 stride-1 conv pass 1 on a spatially padded NHWC activation.
    Returns band-layout conv output (f32), per-band partial stats and geometry."""
    x_pad = x_pad.astype(ACT_DTYPE)
    n, hp, wp, cin = x_pad.shape
    kh = kw = 3
    ho, wo = hp - kh + 1, wp - kw + 1
    cout = w.shape[-1]
    wpp = _round_up(wp, 8)                    # sublane-align the row stride
    th = _choose_th(ho, wpp, kh, cin, cout)
    nb = ho // th
    b = n * nb
    r = th * wpp                              # output rows per band (padded grid)
    in_rows = (th + kh - 1) * wpp + 8         # + tail so every tap slice is in-bounds
    xw = x_pad
    if wpp != wp:
        xw = jnp.pad(xw, ((0, 0), (0, 0), (0, wpp - wp), (0, 0)))
    if nb == 1:
        bands = xw.reshape(n, hp * wpp, cin)
    else:
        bands = jnp.stack([xw[:, hb * th: hb * th + th + kh - 1]
                           for hb in range(nb)], axis=1)
        bands = bands.reshape(b, (th + kh - 1) * wpp, cin)
    bands = jnp.pad(bands, ((0, 0), (0, in_rows - bands.shape[1]), (0, 0)))
    offsets = tuple(dh * wpp + dw for dh in range(kh) for dw in range(kw))
    mask = np.zeros((8, r), np.float32)
    mask[0, :] = (np.arange(r) % wpp < wo).astype(np.float32)
    y, stats = _conv_pass1_call(bands, w, mask, offsets, r)
    geom = dict(n=n, nb=nb, th=th, wpp=wpp, ho=ho, wo=wo, count=n * ho * wo)
    return y, stats, geom


def stem_pass1(x_pad, w, tm_cap=1024):
    """7x7 stem: one-off im2col folds 49 taps x Cin into K so each tile is a
    single MXU matmul instead of 49 nearly-empty K=128 matmuls."""
    n, hp, wp, cin = x_pad.shape
    kpad, cout = w.shape[1], w.shape[2]
    k = 7
    ho, wo = hp - k + 1, wp - k + 1
    cols = [x_pad[:, dh:dh + ho, dw:dw + wo, :]
            for dh in range(k) for dw in range(k)]
    cols = jnp.concatenate(cols, axis=-1)                     # (N, Ho, Wo, 49*Cin)
    kreal = k * k * cin
    cols = jnp.pad(cols, ((0, 0), (0, 0), (0, 0), (0, kpad - kreal)))
    cols = cols.astype(ACT_DTYPE)
    m = n * ho * wo
    tm = _pick_rows(m, tm_cap)
    nt = m // tm
    xb = cols.reshape(nt, tm, kpad)
    mask = np.zeros((8, tm), np.float32)
    mask[0, :] = 1.0
    y, stats = _conv_pass1_call(xb, w, mask, offsets=(0,), out_rows=tm)
    return y.reshape(m, cout), stats, dict(n=n, ho=ho, wo=wo, count=m)


def _bn_scale_shift(stats, count, gamma, beta):
    """Reduce per-tile partial sums (tiny XLA op) into the BN affine."""
    s = jnp.sum(stats[:, 0, 0, :], axis=0)
    s2 = jnp.sum(stats[:, 1, 0, :], axis=0)
    mean = s / float(count)
    var = jnp.maximum(s2 / float(count) - mean * mean, 0.0)
    scale = gamma * jax.lax.rsqrt(var + EPS)
    shift = beta - mean * scale
    return scale, shift


def _band_epilogue_call(y_bands, scale, shift, geom, relu, residual, out_dtype):
    b, r, c = y_bands.shape
    th, wpp, wo = geom['th'], geom['wpp'], geom['wo']
    args = [y_bands, scale.reshape(1, c).astype(jnp.float32),
            shift.reshape(1, c).astype(jnp.float32)]
    specs = [pl.BlockSpec((1, r, c), lambda i: (i, 0, 0)),
             pl.BlockSpec((1, c), lambda i: (0, 0)),
             pl.BlockSpec((1, c), lambda i: (0, 0))]
    has_res = residual is not None
    if has_res:
        args.append(residual.reshape(b, th, wo, c))           # natural layout skip
        specs.append(pl.BlockSpec((1, th, wo, c), lambda i: (i, 0, 0, 0)))
    est = r * c * 4 + 2 * c * 4 + th * wo * c * (2 + (2 if has_res else 0))
    out = pl.pallas_call(
        _make_band_epilogue_kernel(th, wpp, wo, relu, has_res),
        grid=(b,),
        in_specs=specs,
        out_specs=pl.BlockSpec((1, th, wo, c), lambda i: (i, 0, 0, 0)),
        out_shape=jax.ShapeDtypeStruct((b, th, wo, c), out_dtype),
        compiler_params=_cparams(est),
    )(*args)
    return out.reshape(geom['n'], geom['ho'], wo, c)


def _affine_call(x2d, scale, shift, relu, out_dtype):
    m, c = x2d.shape
    tm = _pick_rows(m, 1024)
    est = tm * c * (x2d.dtype.itemsize + 2) + 2 * c * 4
    return pl.pallas_call(
        _make_affine_kernel(relu),
        grid=(m // tm,),
        in_specs=[pl.BlockSpec((tm, c), lambda i: (i, 0)),
                  pl.BlockSpec((1, c), lambda i: (0, 0)),
                  pl.BlockSpec((1, c), lambda i: (0, 0))],
        out_specs=pl.BlockSpec((tm, c), lambda i: (i, 0)),
        out_shape=jax.ShapeDtypeStruct((m, c), out_dtype),
        compiler_params=_cparams(est),
    )(x2d, scale.reshape(1, c).astype(jnp.float32),
      shift.reshape(1, c).astype(jnp.float32))


def _stats_call(x2d):
    m, c = x2d.shape
    tm = _pick_rows(m, 1024)
    mask = np.zeros((8, tm), np.float32)
    mask[0, :] = 1.0
    est = tm * c * x2d.dtype.itemsize + 8 * tm * 4 + 16 * c * 4
    return pl.pallas_call(
        _stats_kernel,
        grid=(m // tm,),
        in_specs=[pl.BlockSpec((tm, c), lambda i: (i, 0)),
                  pl.BlockSpec((8, tm), lambda i: (0, 0))],
        out_specs=pl.BlockSpec((1, 2, 8, c), lambda i: (i, 0, 0, 0)),
        out_shape=jax.ShapeDtypeStruct((m // tm, 2, 8, c), jnp.float32),
        compiler_params=_cparams(est),
    )(x2d, jnp.asarray(mask))


def downsample_pallas(x, filt_size=3, stride=2):
    """Antialiased Downsample: reflect pad(1), [1,2,1]x[1,2,1]/16 blur, stride 2."""
    # TODO(synk): build the 9 stride-2 taps in-kernel (strided pl.ds) or fuse the
    #             blur into the previous conv epilogue to drop the tap blow-up.
    n, h, w, c = x.shape
    xp = jnp.pad(x, ((0, 0), (1, 1), (1, 1), (0, 0)), mode='reflect')
    ho = (h + 2 - filt_size) // stride + 1
    wo = (w + 2 - filt_size) // stride + 1
    m = n * ho * wo
    taps = [xp[:, dh:dh + (ho - 1) * stride + 1:stride,
                  dw:dw + (wo - 1) * stride + 1:stride, :]
            for dh in range(filt_size) for dw in range(filt_size)]
    p = jnp.stack(taps, axis=0).reshape(filt_size * filt_size, m, c)
    tm = _pick_rows(m, 1024)
    est = 9 * tm * c * p.dtype.itemsize + tm * c * x.dtype.itemsize
    out = pl.pallas_call(
        _blur_kernel,
        grid=(m // tm,),
        in_specs=[pl.BlockSpec((9, tm, c), lambda i: (0, i, 0))],
        out_specs=pl.BlockSpec((tm, c), lambda i: (i, 0)),
        out_shape=jax.ShapeDtypeStruct((m, c), x.dtype),
        compiler_params=_cparams(est),
    )(p)
    return out.reshape(n, ho, wo, c)


def resnet_block_pallas(x, p):
    """x + (reflpad1 -> conv3 -> BN -> ReLU -> reflpad1 -> conv3 -> BN)."""
    xp = jnp.pad(x, ((0, 0), (1, 1), (1, 1), (0, 0)), mode='reflect')
    y1, st1, g1 = conv3_pass1(xp, p['w1'])
    sc1, sh1 = _bn_scale_shift(st1, g1['count'], p['g1'], p['b1'])
    h = _band_epilogue_call(y1, sc1, sh1, g1, relu=True, residual=None,
                            out_dtype=ACT_DTYPE)
    hp_ = jnp.pad(h, ((0, 0), (1, 1), (1, 1), (0, 0)), mode='reflect')
    y2, st2, g2 = conv3_pass1(hp_, p['w2'])
    sc2, sh2 = _bn_scale_shift(st2, g2['count'], p['g2'], p['b2'])
    return _band_epilogue_call(y2, sc2, sh2, g2, relu=False, residual=x,
                               out_dtype=ACT_DTYPE)


# ----------------------------- model -----------------------------------------

def init_params(key, input_nc, ngf, n_blocks):
    keys = iter(jax.random.split(key, 3 + 2 * n_blocks))

    def conv3_w(cin, cout):
        w = 0.02 * jax.random.normal(next(keys), (9, cin, cout), jnp.float32)
        w = jnp.pad(w, ((0, 0), (0, _cpad(cin) - cin), (0, _cpad(cout) - cout)))
        return w.astype(jnp.bfloat16)

    def stem_w(cin, cout, k=7):
        kreal = k * k * cin
        kpad = _round_up(kreal, LANE)
        w = 0.02 * jax.random.normal(next(keys), (kreal, cout), jnp.float32)
        w = jnp.pad(w, ((0, kpad - kreal), (0, _cpad(cout) - cout)))
        return w.reshape(1, kpad, _cpad(cout)).astype(jnp.bfloat16)

    def bn_p(c):
        cp = _cpad(c)
        return jnp.ones((cp,), jnp.float32), jnp.zeros((cp,), jnp.float32)

    params = {'w0': stem_w(input_nc, ngf)}
    params['g0'], params['b0'] = bn_p(ngf)
    mult = 1
    for i in range(2):
        cin, cout = ngf * mult, ngf * mult * 2
        params[f'wd{i}'] = conv3_w(cin, cout)
        params[f'gd{i}'], params[f'bd{i}'] = bn_p(cout)
        mult *= 2
    dim = ngf * mult
    for i in range(n_blocks):
        g1, b1 = bn_p(dim)
        g2, b2 = bn_p(dim)
        params[f'block{i}'] = dict(w1=conv3_w(dim, dim), g1=g1, b1=b1,
                                   w2=conv3_w(dim, dim), g2=g2, b2=b2)
    return params


def build_layers(params, ngf, n_blocks):
    """Mirror nn.Sequential layer indexing of ResnetGenerator.model."""
    layers = [('reflect_pad', 3),
              ('conv', dict(kind='stem', w=params['w0'], cout=ngf)),
              ('bn', dict(g=params['g0'], b=params['b0'])),
              ('relu', None)]
    mult = 1
    for i in range(2):
        cout = ngf * mult * 2
        layers += [('conv', dict(kind='conv3', w=params[f'wd{i}'], pad=1,
                                 cout=cout)),
                   ('bn', dict(g=params[f'gd{i}'], b=params[f'bd{i}'])),
                   ('relu', None),
                   ('downsample', None)]
        mult *= 2
    for i in range(n_blocks):
        layers.append(('resblock', params[f'block{i}']))
    return layers


def resnet_generator_forward(model_layers, x_nchw, layers=(), encode_only=True):
    """Faithful port of ResnetGenerator.forward (feature-extraction path).
    conv->bn->relu triples are fused (two-pass kernels) whenever the intermediate
    layer ids are not requested as features."""
    layer_ids = list(layers)
    if -1 in layer_ids:
        layer_ids.append(len(model_layers))
    if len(layer_ids) == 0:
        return None                              # matches PyTorch fall-through
    tap = set(layer_ids)
    last_requested = layer_ids[-1]

    feat = jnp.transpose(x_nchw, (0, 2, 3, 1))   # NCHW -> NHWC (real channels)
    real_c = feat.shape[-1]
    pending_stats = None

    feats = []
    i, L = 0, len(model_layers)
    while i < L:
        kind, p = model_layers[i]
        consumed = 1
        new_pending = None

        if kind == 'reflect_pad':
            feat = jnp.pad(feat, ((0, 0), (p, p), (p, p), (0, 0)),
                           mode='reflect')
        elif kind == 'conv':
            fuse_bn = (i + 1 < L and model_layers[i + 1][0] == 'bn'
                       and i not in tap)
            fuse_relu = (fuse_bn and i + 2 < L
                         and model_layers[i + 2][0] == 'relu'
                         and (i + 1) not in tap)
            gamma = beta = None
            if fuse_bn:
                gamma = model_layers[i + 1][1]['g']
                beta = model_layers[i + 1][1]['b']
            cout_p = p['w'].shape[-1]
            if p['kind'] == 'stem':
                y2d, stats, geom = stem_pass1(feat, p['w'])
            else:
                pd = p.get('pad', 0)
                x_in = feat
                if pd:
                    x_in = jnp.pad(feat, ((0, 0), (pd, pd), (pd, pd), (0, 0)))
                y_bands, stats, geom = conv3_pass1(x_in, p['w'])
            if fuse_bn:
                scale, shift = _bn_scale_shift(stats, geom['count'], gamma, beta)
            else:
                scale = jnp.ones((cout_p,), jnp.float32)
                shift = jnp.zeros((cout_p,), jnp.float32)
                new_pending = dict(stats=stats, count=geom['count'])
            if p['kind'] == 'stem':
                out2d = _affine_call(y2d, scale, shift, relu=fuse_relu,
                                     out_dtype=ACT_DTYPE)
                feat = out2d.reshape(geom['n'], geom['ho'], geom['wo'], cout_p)
            else:
                feat = _band_epilogue_call(y_bands, scale, shift, geom,
                                           relu=fuse_relu, residual=None,
                                           out_dtype=ACT_DTYPE)
            real_c = p['cout']
            consumed += int(fuse_bn) + int(fuse_relu)
        elif kind == 'bn':
            n_, h_, w_, c_ = feat.shape
            x2d = feat.reshape(n_ * h_ * w_, c_)
            if pending_stats is not None:
                stats, count = pending_stats['stats'], pending_stats['count']
            else:
                stats, count = _stats_call(x2d), n_ * h_ * w_
            scale, shift = _bn_scale_shift(stats, count, p['g'], p['b'])
            feat = _affine_call(x2d, scale, shift, relu=False,
                                out_dtype=ACT_DTYPE).reshape(feat.shape)
        elif kind == 'relu':
            n_, h_, w_, c_ = feat.shape
            x2d = feat.reshape(n_ * h_ * w_, c_)
            feat = _affine_call(x2d, jnp.ones((c_,), jnp.float32),
                                jnp.zeros((c_,), jnp.float32), relu=True,
                                out_dtype=ACT_DTYPE).reshape(feat.shape)
        elif kind == 'downsample':
            feat = downsample_pallas(feat)
        elif kind == 'resblock':
            feat = resnet_block_pallas(feat, p)
        else:
            raise ValueError(kind)

        pending_stats = new_pending
        out_id = i + consumed - 1
        if out_id in tap:
            f = feat[..., :real_c] if feat.shape[-1] != real_c else feat
            feats.append(jnp.transpose(f, (0, 3, 1, 2)).astype(jnp.float32))
        if out_id == last_requested and encode_only:
            return feats
        i = out_id + 1
    return None


# ----------------------------- main ------------------------------------------

if __name__ == "__main__":
    key = jax.random.PRNGKey(0)
    kx, kp = jax.random.split(key)

    input_nc = 3
    ngf = 8
    n_blocks = 2

    # PyTorch-style NCHW input.
    x = jax.random.normal(kx, (2, input_nc, 16, 16), dtype=jnp.float32)

    params = init_params(kp, input_nc, ngf, n_blocks)
    model_layers = build_layers(params, ngf, n_blocks)
    last_id = len(model_layers) - 1

    # Fully fused path: only the final feature is requested.
    feats = resnet_generator_forward(model_layers, x, layers=[last_id],
                                     encode_only=True)
    out = feats[0]
    jax.block_until_ready(out)
    assert out.shape == (2, ngf * 4, 4, 4), out.shape

    # Multi-tap path (CUT-style feature extraction at several layer ids).
    feats2 = resnet_generator_forward(model_layers, x, layers=[0, last_id],
                                      encode_only=True)
    jax.block_until_ready(feats2[-1])
    assert feats2[0].shape == (2, input_nc, 22, 22), feats2[0].shape
    assert feats2[1].shape == (2, ngf * 4, 4, 4), feats2[1].shape

    print("KERNEL_OK")
</pallas_src>

<mosaic_0001>
module attributes {stable_mosaic.version = 11 : i64} {
  func.func @kernel(%arg0: i32, %arg1: memref<1x512x256xbf16, #tpu.memory_space<vmem>>, %arg2: memref<1x256x128xbf16, #tpu.memory_space<vmem>>, %arg3: memref<8x512xf32, #tpu.memory_space<vmem>>, %arg4: memref<1x512x128xf32, #tpu.memory_space<vmem>>, %arg5: memref<1x2x8x128xf32, #tpu.memory_space<vmem>>) attributes {dimension_semantics = [#tpu.dimension_semantics<parallel>], iteration_bounds = array<i64: 1>, scalar_prefetch = 0 : i64, scratch_operands = 0 : i64, tpu.core_type = #tpu.core_type<tc>, window_params = [{transform_indices = @transform_0, window_bounds = array<i64: 1, 512, 256>}, {pipeline_mode = #tpu.pipeline_mode<synchronous>, transform_indices = @transform_1, window_bounds = array<i64: 1, 256, 128>}, {pipeline_mode = #tpu.pipeline_mode<synchronous>, transform_indices = @transform_2, window_bounds = array<i64: 8, 512>}, {transform_indices = @transform_3, window_bounds = array<i64: 1, 512, 128>}, {transform_indices = @transform_4, window_bounds = array<i64: 1, 2, 8, 128>}]} {
    %c0 = arith.constant 0 : index
    %c0_0 = arith.constant 0 : index
    %c0_1 = arith.constant 0 : index
    %0 = vector.load %arg1[%c0, %c0_0, %c0_1] : memref<1x512x256xbf16, #tpu.memory_space<vmem>>, vector<1x512x256xbf16>
    %1 = vector.shape_cast %0 : vector<1x512x256xbf16> to vector<512x256xbf16>
    %c0_2 = arith.constant 0 : index
    %c0_3 = arith.constant 0 : index
    %c0_4 = arith.constant 0 : index
    %2 = vector.load %arg2[%c0_2, %c0_3, %c0_4] : memref<1x256x128xbf16, #tpu.memory_space<vmem>>, vector<1x256x128xbf16>
    %3 = vector.shape_cast %2 : vector<1x256x128xbf16> to vector<256x128xbf16>
    %cst = arith.constant dense<0.000000e+00> : vector<512x128xf32>
    %4 = tpu.matmul %1, %3, %cst {dimension_numbers = #tpu.dot_dimension_numbers<[1], [0], [0], [1], [0, 0, 1, 1], [], []>} : vector<512x256xbf16>, vector<256x128xbf16>, vector<512x128xf32> -> vector<512x128xf32>
    %c0_5 = arith.constant 0 : index
    %c0_6 = arith.constant 0 : index
    %c0_7 = arith.constant 0 : index
    %5 = vector.load %arg4[%c0_5, %c0_6, %c0_7] : memref<1x512x128xf32, #tpu.memory_space<vmem>>, vector<1x512x128xf32>
    %6 = vector.shape_cast %5 : vector<1x512x128xf32> to vector<512x128xf32>
    %7 = vector.shape_cast %4 : vector<512x128xf32> to vector<1x512x128xf32>
    tpu.vector_store %arg4[%c0_5, %c0_6, %c0_7], %7 {strides = array<i32>} : memref<1x512x128xf32, #tpu.memory_space<vmem>>, vector<1x512x128xf32>,
    %c0_8 = arith.constant 0 : index
    %c0_9 = arith.constant 0 : index
    %8 = vector.load %arg3[%c0_8, %c0_9] : memref<8x512xf32, #tpu.memory_space<vmem>>, vector<8x512xf32>
    %cst_10 = arith.constant dense<0.000000e+00> : vector<8x128xf32>
    %9 = tpu.matmul %8, %4, %cst_10 {dimension_numbers = #tpu.dot_dimension_numbers<[1], [0], [0], [1], [0, 0, 1, 1], [], []>} : vector<8x512xf32>, vector<512x128xf32>, vector<8x128xf32> -> vector<8x128xf32>
    %c0_11 = arith.constant 0 : index
    %c0_12 = arith.constant 0 : index
    %c0_13 = arith.constant 0 : index
    %c0_14 = arith.constant 0 : index
    %10 = vector.load %arg5[%c0_11, %c0_12, %c0_13, %c0_14] : memref<1x2x8x128xf32, #tpu.memory_space<vmem>>, vector<1x1x8x128xf32>
    %11 = vector.shape_cast %10 : vector<1x1x8x128xf32> to vector<8x128xf32>
    %12 = vector.shape_cast %9 : vector<8x128xf32> to vector<1x1x8x128xf32>
    tpu.vector_store %arg5[%c0_11, %c0_12, %c0_13, %c0_14], %12 {strides = array<i32>} : memref<1x2x8x128xf32, #tpu.memory_space<vmem>>, vector<1x1x8x128xf32>,
    %13 = arith.mulf %4, %4 : vector<512x128xf32>
    %cst_15 = arith.constant dense<0.000000e+00> : vector<8x128xf32>
    %14 = tpu.matmul %8, %13, %cst_15 {dimension_numbers = #tpu.dot_dimension_numbers<[1], [0], [0], [1], [0, 0, 1, 1], [], []>} : vector<8x512xf32>, vector<512x128xf32>, vector<8x128xf32> -> vector<8x128xf32>
    %c0_16 = arith.constant 0 : index
    %c1 = arith.constant 1 : index
    %c0_17 = arith.constant 0 : index
    %c0_18 = arith.constant 0 : index
    %15 = vector.load %arg5[%c0_16, %c1, %c0_17, %c0_18] : memref<1x2x8x128xf32, #tpu.memory_space<vmem>>, vector<1x1x8x128xf32>
    %16 = vector.shape_cast %15 : vector<1x1x8x128xf32> to vector<8x128xf32>
    %17 = vector.shape_cast %14 : vector<8x128xf32> to vector<1x1x8x128xf32>
    tpu.vector_store %arg5[%c0_16, %c1, %c0_17, %c0_18], %17 {strides = array<i32>} : memref<1x2x8x128xf32, #tpu.memory_space<vmem>>, vector<1x1x8x128xf32>,
    return
  }
  func.func @transform_0(%arg0: i32) -> (i32, i32, i32) {
    %c0_i32 = arith.constant 0 : i32
    %c0_i32_0 = arith.constant 0 : i32
    %c0_i32_1 = arith.constant 0 : i32
    return %arg0, %c0_i32, %c0_i32_0 : i32, i32, i32
  }
  func.func @transform_1(%arg0: i32) -> (i32, i32, i32) {
    %c0_i32 = arith.constant 0 : i32
    %c0_i32_0 = arith.constant 0 : i32
    %c0_i32_1 = arith.constant 0 : i32
    %c0_i32_2 = arith.constant 0 : i32
    return %c0_i32, %c0_i32_0, %c0_i32_1 : i32, i32, i32
  }
  func.func @transform_2(%arg0: i32) -> (i32, i32) {
    %c0_i32 = arith.constant 0 : i32
    %c0_i32_0 = arith.constant 0 : i32
    %c0_i32_1 = arith.constant 0 : i32
    return %c0_i32, %c0_i32_0 : i32, i32
  }
  func.func @transform_3(%arg0: i32) -> (i32, i32, i32) {
    %c0_i32 = arith.constant 0 : i32
    %c0_i32_0 = arith.constant 0 : i32
    %c0_i32_1 = arith.constant 0 : i32
    return %arg0, %c0_i32, %c0_i32_0 : i32, i32, i32
  }
  func.func @transform_4(%arg0: i32) -> (i32, i32, i32, i32) {
    %c0_i32 = arith.constant 0 : i32
    %c0_i32_0 = arith.constant 0 : i32
    %c0_i32_1 = arith.constant 0 : i32
    %c0_i32_2 = arith.constant 0 : i32
    return %arg0, %c0_i32, %c0_i32_0, %c0_i32_1 : i32, i32, i32, i32
  }
}

</mosaic_0001>

<bundles_post_ra>
// kernel: tpu_custom_call.1
= control target key start
LH: loop header
LB: loop body
LE: loop exit
PB: predicated region body
PF: predicated region fallthrough
CT: control target
= control target key end

     0   :  { %10 = vsyncpa [#allocation3], 0  ;;  %s2595_s0 = inlined_call_operand.hbm [shape: bf16[1,512,256], index: 0, kind: input, shape index: {}]   ;;  %s2596_s1 = inlined_call_operand.hbm [shape: bf16[1,256,128], index: 1, kind: input, shape index: {}]   ;;  %s2597_s2 = inlined_call_operand.hbm [shape: f32[8,512], index: 2, kind: input, shape index: {}]   ;;  %s2598_s3 = inlined_call_operand.hbm [shape: f32[1,512,128], index: 3, kind: output, shape index: {0}]   ;;  %s2599_s4 = inlined_call_operand.hbm [shape: f32[1,2,8,128], index: 4, kind: output, shape index: {1}]  }
   0x1   :  { %11 = vsyncpa [#allocation6], 0 }
   0x2   :  { %12 = vsyncpa [#allocation4], 0 }
   0x3   :  { %13 = vsyncpa [#allocation10], 0  ;;  %s1928_s15 = smov [#allocation5]   ;;  %s1810_s19 = scalar_lea.hbm %s2596_s1, 2048 }
   0x4   :  { %s31_s16 = sshll.u32 %s1928_s15, 4  ;;  %p1811_p0 = scmp.ne.s32.totalorder %s2596_s1, %s1810_s19  ;;  %s32_s16 = int_to_ptr.vmem [resolvable:$true] %s31_s16 }
   0x5   :  { %p1814_p1 = scmp.lt.u32.totalorder %s1810_s19, %s2596_s1 }
   0x7   :  { %p1816_p2 = pnand %p1814_p1, %p1811_p0 }
   0x9   :  { %1819 = shalt.err (!%p1816_p2)
}
   0xa   :  { %s1820_s24 = scalar_lea.vmem %s32_s16, 2048  ;;  %p1825_p4 = scmp.lt.s32.totalorder %s32_s16, %s32_s16 }
   0xb   :  { %p1821_p3 = scmp.ne.s32.totalorder %s32_s16, %s1820_s24  ;;  %p1826_p5 = scmp.lt.s32.totalorder %s1820_s24, %s1820_s24 }
   0xd   :  { %p1827_p6 = por %p1826_p5, %p1825_p4 }
   0xf   :  { %p1828_p7 = pnand %p1827_p6, %p1821_p3 }
  0x11   :  { %1831 = shalt.err (!%p1828_p7)
}
  0x12   :  { %s1929_s25 = smov 64   ;;  %s1930_s26 = smov 4  }
  0x13   :  { %37 = dma.hbm_to_vmem [thread:$0]  %s2596_s1, 2048, %s32_s16, [#allocation6], %s1929_s25, %s1929_s25, %s1930_s26  }
  0x14   :  { %s1931_s29 = smov [#allocation2]   ;;  %s1832_s7 = scalar_lea.hbm %s2595_s0, 8192 }
  0x15   :  { %s19_s30 = sshll.u32 %s1931_s29, 4  ;;  %p1833_p8 = scmp.ne.s32.totalorder %s2595_s0, %s1832_s7  ;;  %s20_s30 = int_to_ptr.vmem [resolvable:$true] %s19_s30 }
  0x16   :  { %p1836_p9 = scmp.lt.u32.totalorder %s1832_s7, %s2595_s0 }
  0x18   :  { %p1838_p10 = pnand %p1836_p9, %p1833_p8 }
  0x1a   :  { %1841 = shalt.err (!%p1838_p10)
}
  0x1b   :  { %s1842_s12 = scalar_lea.vmem %s20_s30, 8192  ;;  %p1847_p12 = scmp.lt.s32.totalorder %s20_s30, %s20_s30 }
  0x1c   :  { %p1843_p11 = scmp.ne.s32.totalorder %s20_s30, %s1842_s12  ;;  %p1848_p13 = scmp.lt.s32.totalorder %s1842_s12, %s1842_s12 }
  0x1e   :  { %p1849_p0 = por %p1848_p13, %p1847_p12 }
  0x20   :  { %p1850_p1 = pnand %p1849_p0, %p1843_p11 }
  0x22   :  { %1853 = shalt.err (!%p1850_p1)
}
  0x23   :  { %s1932_s1 = smov 128   ;;  %s1933_s13 = smov 8  }
  0x24   :  { %25 = dma.hbm_to_vmem [thread:$0]  %s2595_s0, 8192, %s20_s30, [#allocation3], %s1932_s1, %s1932_s1, %s1933_s13  }
  0x25   :  { %s1934_s16 = smov [#allocation7]   ;;  %s1854_s20 = scalar_lea.hbm %s2597_s2, 512 }
  0x26   :  { %s44_s17 = sshll.u32 %s1934_s16, 4  ;;  %p1855_p2 = scmp.ne.s32.totalorder %s2597_s2, %s1854_s20  ;;  %s45_s17 = int_to_ptr.vmem [resolvable:$true] %s44_s17 }
  0x27   :  { %p1858_p3 = scmp.lt.u32.totalorder %s1854_s20, %s2597_s2 }
  0x29   :  { %p1860_p4 = pnand %p1858_p3, %p1855_p2 }
  0x2b   :  { %1863 = shalt.err (!%p1860_p4)
}
  0x2c   :  { %s1864_s25 = scalar_lea.vmem %s45_s17, 512  ;;  %p1869_p6 = scmp.lt.s32.totalorder %s45_s17, %s45_s17 }
  0x2d   :  { %p1865_p5 = scmp.ne.s32.totalorder %s45_s17, %s1864_s25  ;;  %p1870_p7 = scmp.lt.s32.totalorder %s1864_s25, %s1864_s25 }
  0x2f   :  { %p1871_p8 = por %p1870_p7, %p1869_p6 }
  0x31   :  { %p1872_p9 = pnand %p1871_p8, %p1865_p5 }
  0x33   :  { %1875 = shalt.err (!%p1872_p9)
}
  0x34   :  { %47 = dma.hbm_to_vmem [thread:$0]  %s2597_s2, 512, %s45_s17, [#allocation6]  }
  0x35   :  { %1920 = dma.done.wait [#allocation3], 8192  }
  0x36   :  { %1921 = vsyncadd [#allocation3], 4294959104 }
  0x37   :  { %1922 = dma.done.wait [#allocation6], 2560  }
  0x38   :  { %1923 = vsyncadd [#allocation6], 4294964736  ;;  %v1935_v0 = vmov 0   ;;  %v1698_v1 = vld [vmem:[#allocation5] sm:$0xff]   ;;  %v1699_v2 = vld [vmem:[#allocation5 + $0x8] sm:$0xff]   ;;  %s1936_s2 = smov [#allocation8]  }
  0x39   :  { %570 = vmatprep.subr.bf16.mxu0 %v1935_v0  ;;  %1656 = vmatprep.subr.bf16.mxu1 %v1935_v0  ;;  %v1700_v3 = vld [vmem:[#allocation5 + $0x10] sm:$0xff]   ;;  %v1701_v4 = vld [vmem:[#allocation5 + $0x18] sm:$0xff]   ;;  %v1702_v5 = vld [vmem:[#allocation5 + $0x20] sm:$0xff]   ;;  %s1279_s27 = sshll.u32 %s1936_s2, 4  ;;  %s1280_s27 = int_to_ptr.vmem [resolvable:$true] %s1279_s27 }
  0x3a   :  { %571 = vmatpush1.bf16.msra.mxu0 %v1698_v1  ;;  %1672 = vmatpush1.bf16.msra.mxu1 %v1698_v1  ;;  %v1716_v6 = vld [vmem:[#allocation2 + $0x4] ss:$8 sps:$4 sm:$0xff]   ;;  %v1704_v8 = vld [vmem:[#allocation5 + $0x30] sm:$0xff]   ;;  %v1705_v9 = vld [vmem:[#allocation5 + $0x38] sm:$0xff]   ;;  %s1876_s28 = scalar_lea.vmem %s1280_s27, 8192  ;;  %p1881_p11 = scmp.lt.s32.totalorder %s1280_s27, %s1280_s27 }
  0x3b   :  { %572 = vmatprep.subr.bf16.mxu0 %v1935_v0  ;;  %1657 = vmatprep.subr.bf16.mxu1 %v1935_v0  ;;  %v1703_v7 = vld [vmem:[#allocation5 + $0x28] sm:$0xff]   ;;  %v1706_v10 = vld [vmem:[#allocation5 + $0x40] sm:$0xff]   ;;  %v1708_v12 = vld [vmem:[#allocation5 + $0x50] sm:$0xff]   ;;  %p1877_p10 = scmp.ne.s32.totalorder %s1280_s27, %s1876_s28  ;;  %p1882_p12 = scmp.lt.s32.totalorder %s1876_s28, %s1876_s28 }
  0x3c   :  { %602 = vmatprep.mubr.bf16.mxu0 %v1716_v6  ;;  %v1707_v11 = vld [vmem:[#allocation5 + $0x48] sm:$0xff]   ;;  %v1709_v13 = vld [vmem:[#allocation5 + $0x58] sm:$0xff]   ;;  %v1710_v15 = vld [vmem:[#allocation5 + $0x60] sm:$0xff]  }
  0x3d   :  { %v1760_v14 = vld [vmem:[#allocation2 + $0x174] ss:$8 sps:$4 sm:$0xff]   ;;  %v1711_v16 = vld [vmem:[#allocation5 + $0x68] sm:$0xff]   ;;  %v1758_v20 = vld [vmem:[#allocation2 + $0x170] ss:$8 sps:$4 sm:$0xff]   ;;  %p1883_p13 = por %p1882_p12, %p1881_p11 }
  0x3e   :  { %573 = vmatpush1.bf16.msra.mxu0 %v1699_v2  ;;  %1673 = vmatpush1.bf16.msra.mxu1 %v1699_v2  ;;  %v1712_v17 = vld [vmem:[#allocation5 + $0x70] sm:$0xff]   ;;  %v1713_v18 = vld [vmem:[#allocation5 + $0x78] sm:$0xff]   ;;  %v1714_v19 = vld [vmem:[#allocation2] ss:$8 sps:$4 sm:$0xff]  }
  0x3f   :  { %574 = vmatprep.subr.bf16.mxu0 %v1935_v0  ;;  %1658 = vmatprep.subr.bf16.mxu1 %v1935_v0  ;;  %v1717_v21 = vld [vmem:[#allocation2 + $0x14] ss:$8 sps:$4 sm:$0xff]   ;;  %v1764_v22 = vld [vmem:[#allocation2 + $0x184] ss:$8 sps:$4 sm:$0xff]   ;;  %v1719_v23 = vld [vmem:[#allocation2 + $0x10] ss:$8 sps:$4 sm:$0xff]   ;;  %p1884_p0 = pnand %p1883_p13, %p1877_p10 }
  0x40   :  { %786 = vmatprep.mubr.bf16.mxu1 %v1760_v14  ;;  %v1767_v24 = vld [vmem:[#allocation2 + $0x180] ss:$8 sps:$4 sm:$0xff]   ;;  %v1720_v25 = vld [vmem:[#allocation2 + $0x24] ss:$8 sps:$4 sm:$0xff]   ;;  %v1770_v26 = vld [vmem:[#allocation2 + $0x194] ss:$8 sps:$4 sm:$0xff]  }
  0x41   :  { %v1722_v27 = vld [vmem:[#allocation2 + $0x20] ss:$8 sps:$4 sm:$0xff]   ;;  %v1773_v28 = vld [vmem:[#allocation2 + $0x190] ss:$8 sps:$4 sm:$0xff]   ;;  %v1723_v29 = vld [vmem:[#allocation2 + $0x34] ss:$8 sps:$4 sm:$0xff]  }
  0x42   :  { %575 = vmatpush1.bf16.msra.mxu0 %v1700_v3  ;;  %1674 = vmatpush1.bf16.msra.mxu1 %v1700_v3  ;;  %v1776_v30 = vld [vmem:[#allocation2 + $0x1a4] ss:$8 sps:$4 sm:$0xff]   ;;  %v1725_v31 = vld [vmem:[#allocation2 + $0x30] ss:$8 sps:$4 sm:$0xff]   ;;  %v1779_v32 = vld [vmem:[#allocation2 + $0x1a0] ss:$8 sps:$4 sm:$0xff]  }
  0x43   :  { %576 = vmatprep.subr.bf16.mxu0 %v1935_v0  ;;  %1659 = vmatprep.subr.bf16.mxu1 %v1935_v0  ;;  %v1726_v33 = vld [vmem:[#allocation2 + $0x44] ss:$8 sps:$4 sm:$0xff]   ;;  %v1782_v34 = vld [vmem:[#allocation2 + $0x1b4] ss:$8 sps:$4 sm:$0xff]   ;;  %v1728_v35 = vld [vmem:[#allocation2 + $0x40] ss:$8 sps:$4 sm:$0xff]  }
  0x44   :  { %v1785_v36 = vld [vmem:[#allocation2 + $0x1b0] ss:$8 sps:$4 sm:$0xff]   ;;  %v1729_v37 = vld [vmem:[#allocation2 + $0x54] ss:$8 sps:$4 sm:$0xff]   ;;  %v1788_v38 = vld [vmem:[#allocation2 + $0x1c4] ss:$8 sps:$4 sm:$0xff]  }
  0x45   :  { %v1731_v39 = vld [vmem:[#allocation2 + $0x50] ss:$8 sps:$4 sm:$0xff]   ;;  %v1791_v40 = vld [vmem:[#allocation2 + $0x1c0] ss:$8 sps:$4 sm:$0xff]   ;;  %v1732_v41 = vld [vmem:[#allocation2 + $0x64] ss:$8 sps:$4 sm:$0xff]  }
  0x46   :  { %577 = vmatpush1.bf16.msra.mxu0 %v1701_v4  ;;  %1675 = vmatpush1.bf16.msra.mxu1 %v1701_v4  ;;  %v1794_v42 = vld [vmem:[#allocation2 + $0x1d4] ss:$8 sps:$4 sm:$0xff]   ;;  %v1734_v43 = vld [vmem:[#allocation2 + $0x60] ss:$8 sps:$4 sm:$0xff]   ;;  %v1797_v44 = vld [vmem:[#allocation2 + $0x1d0] ss:$8 sps:$4 sm:$0xff]  }
  0x47   :  { %578 = vmatprep.subr.bf16.mxu0 %v1935_v0  ;;  %1660 = vmatprep.subr.bf16.mxu1 %v1935_v0  ;;  %v1735_v45 = vld [vmem:[#allocation2 + $0x74] ss:$8 sps:$4 sm:$0xff]   ;;  %v1800_v46 = vld [vmem:[#allocation2 + $0x1e4] ss:$8 sps:$4 sm:$0xff]   ;;  %v1737_v47 = vld [vmem:[#allocation2 + $0x70] ss:$8 sps:$4 sm:$0xff]  }
  0x48   :  { %v1803_v48 = vld [vmem:[#allocation2 + $0x1e0] ss:$8 sps:$4 sm:$0xff]   ;;  %v1738_v49 = vld [vmem:[#allocation2 + $0x84] ss:$8 sps:$4 sm:$0xff]   ;;  %v1806_v50 = vld [vmem:[#allocation2 + $0x1f4] ss:$8 sps:$4 sm:$0xff]  }
  0x49   :  { %v1740_v51 = vld [vmem:[#allocation2 + $0x80] ss:$8 sps:$4 sm:$0xff]   ;;  %v1809_v52 = vld [vmem:[#allocation2 + $0x1f0] ss:$8 sps:$4 sm:$0xff]   ;;  %v1741_v53 = vld [vmem:[#allocation2 + $0x94] ss:$8 sps:$4 sm:$0xff]  }
  0x4a   :  { %579 = vmatpush1.bf16.msra.mxu0 %v1702_v5  ;;  %1676 = vmatpush1.bf16.msra.mxu1 %v1702_v5  ;;  %v1743_v54 = vld [vmem:[#allocation2 + $0x90] ss:$8 sps:$4 sm:$0xff]   ;;  %v1744_v55 = vld [vmem:[#allocation2 + $0xa4] ss:$8 sps:$4 sm:$0xff]   ;;  %v1746_v56 = vld [vmem:[#allocation2 + $0xa0] ss:$8 sps:$4 sm:$0xff]  }
  0x4b   :  { %580 = vmatprep.subr.bf16.mxu0 %v1935_v0  ;;  %1661 = vmatprep.subr.bf16.mxu1 %v1935_v0  ;;  %v1747_v57 = vld [vmem:[#allocation2 + $0xb4] ss:$8 sps:$4 sm:$0xff]   ;;  %v1749_v58 = vld [vmem:[#allocation2 + $0xb0] ss:$8 sps:$4 sm:$0xff]   ;;  %v1750_v59 = vld [vmem:[#allocation2 + $0xc4] ss:$8 sps:$4 sm:$0xff]  }
  0x4c   :  { %v1752_v60 = vld [vmem:[#allocation2 + $0xc0] ss:$8 sps:$4 sm:$0xff]   ;;  %v1753_v61 = vld [vmem:[#allocation2 + $0xd4] ss:$8 sps:$4 sm:$0xff]   ;;  %v1755_v62 = vld [vmem:[#allocation2 + $0xd0] ss:$8 sps:$4 sm:$0xff]  }
  0x4d   :  { %v1756_v63 = vld [vmem:[#allocation2 + $0xe4] ss:$8 sps:$4 sm:$0xff]   ;;  %v1762_v1 = vld [vmem:[#allocation2 + $0xf4] ss:$8 sps:$4 sm:$0xff]   ;;  %v1766_v2 = vld [vmem:[#allocation2 + $0xf0] ss:$8 sps:$4 sm:$0xff]  }
  0x4e   :  { %581 = vmatpush1.bf16.msra.mxu0 %v1703_v7  ;;  %1677 = vmatpush1.bf16.msra.mxu1 %v1703_v7  ;;  %v1768_v3 = vld [vmem:[#allocation2 + $0x104] ss:$8 sps:$4 sm:$0xff]   ;;  %v1772_v4 = vld [vmem:[#allocation2 + $0x100] ss:$8 sps:$4 sm:$0xff]   ;;  %v1774_v5 = vld [vmem:[#allocation2 + $0x114] ss:$8 sps:$4 sm:$0xff]  }
  0x4f   :  { %582 = vmatprep.subr.bf16.mxu0 %v1935_v0  ;;  %1662 = vmatprep.subr.bf16.mxu1 %v1935_v0  ;;  %v1778_v6 = vld [vmem:[#allocation2 + $0x110] ss:$8 sps:$4 sm:$0xff]   ;;  %v1780_v7 = vld [vmem:[#allocation2 + $0x124] ss:$8 sps:$4 sm:$0xff]  }
  0x50   :  { %v1802_v14 = vld [vmem:[#allocation2 + $0x150] ss:$8 sps:$4 sm:$0xff]  }
  0x52   :  { %583 = vmatpush1.bf16.msra.mxu0 %v1704_v8  ;;  %1678 = vmatpush1.bf16.msra.mxu1 %v1704_v8  ;;  %v1784_v8 = vld [vmem:[#allocation2 + $0x120] ss:$8 sps:$4 sm:$0xff]  }
  0x53   :  { %584 = vmatprep.subr.bf16.mxu0 %v1935_v0  ;;  %1663 = vmatprep.subr.bf16.mxu1 %v1935_v0 }
  0x56   :  { %585 = vmatpush1.bf16.msra.mxu0 %v1705_v9  ;;  %1679 = vmatpush1.bf16.msra.mxu1 %v1705_v9  ;;  %v1786_v9 = vld [vmem:[#allocation2 + $0x134] ss:$8 sps:$4 sm:$0xff]  }
  0x57   :  { %586 = vmatprep.subr.bf16.mxu0 %v1935_v0  ;;  %1664 = vmatprep.subr.bf16.mxu1 %v1935_v0 }
  0x5a   :  { %587 = vmatpush1.bf16.msra.mxu0 %v1706_v10  ;;  %1680 = vmatpush1.bf16.msra.mxu1 %v1706_v10  ;;  %v1790_v10 = vld [vmem:[#allocation2 + $0x130] ss:$8 sps:$4 sm:$0xff]  }
  0x5b   :  { %588 = vmatprep.subr.bf16.mxu0 %v1935_v0  ;;  %1665 = vmatprep.subr.bf16.mxu1 %v1935_v0 }
  0x5e   :  { %589 = vmatpush1.bf16.msra.mxu0 %v1707_v11  ;;  %1681 = vmatpush1.bf16.msra.mxu1 %v1707_v11  ;;  %v1792_v11 = vld [vmem:[#allocation2 + $0x144] ss:$8 sps:$4 sm:$0xff]  }
  0x5f   :  { %590 = vmatprep.subr.bf16.mxu0 %v1935_v0  ;;  %1666 = vmatprep.subr.bf16.mxu1 %v1935_v0 }
  0x62   :  { %591 = vmatpush1.bf16.msra.mxu0 %v1708_v12  ;;  %1682 = vmatpush1.bf16.msra.mxu1 %v1708_v12  ;;  %v1796_v12 = vld [vmem:[#allocation2 + $0x140] ss:$8 sps:$4 sm:$0xff]  }
  0x63   :  { %592 = vmatprep.subr.bf16.mxu0 %v1935_v0  ;;  %1667 = vmatprep.subr.bf16.mxu1 %v1935_v0 }
  0x66   :  { %593 = vmatpush1.bf16.msra.mxu0 %v1709_v13  ;;  %1683 = vmatpush1.bf16.msra.mxu1 %v1709_v13  ;;  %v1798_v13 = vld [vmem:[#allocation2 + $0x154] ss:$8 sps:$4 sm:$0xff]  }
  0x67   :  { %594 = vmatprep.subr.bf16.mxu0 %v1935_v0  ;;  %1668 = vmatprep.subr.bf16.mxu1 %v1935_v0 }
  0x6a   :  { %595 = vmatpush1.bf16.msra.mxu0 %v1710_v15  ;;  %1684 = vmatpush1.bf16.msra.mxu1 %v1710_v15  ;;  %v1804_v15 = vld [vmem:[#allocation2 + $0x164] ss:$8 sps:$4 sm:$0xff]  }
  0x6b   :  { %596 = vmatprep.subr.bf16.mxu0 %v1935_v0  ;;  %1669 = vmatprep.subr.bf16.mxu1 %v1935_v0 }
  0x6e   :  { %597 = vmatpush1.bf16.msra.mxu0 %v1711_v16  ;;  %1685 = vmatpush1.bf16.msra.mxu1 %v1711_v16  ;;  %v1808_v16 = vld [vmem:[#allocation2 + $0x160] ss:$8 sps:$4 sm:$0xff]  }
  0x6f   :  { %598 = vmatprep.subr.bf16.mxu0 %v1935_v0  ;;  %1670 = vmatprep.subr.bf16.mxu1 %v1935_v0 }
  0x72   :  { %599 = vmatpush1.bf16.msra.mxu0 %v1712_v17  ;;  %1686 = vmatpush1.bf16.msra.mxu1 %v1712_v17 }
  0x73   :  { %600 = vmatprep.subr.bf16.mxu0 %v1935_v0  ;;  %1671 = vmatprep.subr.bf16.mxu1 %v1935_v0  ;;  %v1761_v0 = vld [vmem:[#allocation2 + $0xe0] ss:$8 sps:$4 sm:$0xff]  }
  0x76   :  { %601 = vmatpush1.bf16.msra.mxu0 %v1713_v18  ;;  %1687 = vmatpush1.bf16.msra.mxu1 %v1713_v18 }
  0x79   :  { %603 = vmatmul.mubr.bf16.vlgmr.msra.gmra.mrb[0].mxu0 %v1714_v19  ;;  %787 = vmatmul.mubr.bf16.vlgmr.msra.gmra.mrb[0].mxu1 %v1758_v20 }
  0x7a   :  { %610 = vmatprep.mubr.bf16.mxu0 %v1717_v21  ;;  %794 = vmatprep.mubr.bf16.mxu1 %v1764_v22 }
  0x81   :  { %611 = vmatmul.mubr.bf16.gmra.mrb[4].mxu0 %v1719_v23  ;;  %795 = vmatmul.mubr.bf16.gmra.mrb[4].mxu1 %v1767_v24 }
  0x82   :  { %618 = vmatprep.mubr.bf16.mxu0 %v1720_v25  ;;  %802 = vmatprep.mubr.bf16.mxu1 %v1770_v26 }
  0x89   :  { %619 = vmatmul.mubr.bf16.gmra.mrb[8].mxu0 %v1722_v27  ;;  %803 = vmatmul.mubr.bf16.gmra.mrb[8].mxu1 %v1773_v28 }
  0x8a   :  { %626 = vmatprep.mubr.bf16.mxu0 %v1723_v29  ;;  %810 = vmatprep.mubr.bf16.mxu1 %v1776_v30 }
  0x91   :  { %627 = vmatmul.mubr.bf16.gmra.mrb[12].mxu0 %v1725_v31  ;;  %811 = vmatmul.mubr.bf16.gmra.mrb[12].mxu1 %v1779_v32  ;;  %v2066_v31 = vld [vmem:[#allocation7 + $0x8] sm:$0xff] }
  0x92   :  { %634 = vmatprep.mubr.bf16.mxu0 %v1726_v33  ;;  %818 = vmatprep.mubr.bf16.mxu1 %v1782_v34 }
  0x99   :  { %635 = vmatmul.mubr.bf16.gmra.mrb[16].mxu0 %v1728_v35  ;;  %819 = vmatmul.mubr.bf16.gmra.mrb[16].mxu1 %v1785_v36 }
  0x9a   :  { %642 = vmatprep.mubr.bf16.mxu0 %v1729_v37  ;;  %826 = vmatprep.mubr.bf16.mxu1 %v1788_v38 }
  0xa1   :  { %643 = vmatmul.mubr.bf16.gmra.mrb[20].mxu0 %v1731_v39  ;;  %827 = vmatmul.mubr.bf16.gmra.mrb[20].mxu1 %v1791_v40 }
  0xa2   :  { %650 = vmatprep.mubr.bf16.mxu0 %v1732_v41  ;;  %834 = vmatprep.mubr.bf16.mxu1 %v1794_v42 }
  0xa9   :  { %651 = vmatmul.mubr.bf16.gmra.mrb[24].mxu0 %v1734_v43  ;;  %835 = vmatmul.mubr.bf16.gmra.mrb[24].mxu1 %v1797_v44 }
  0xaa   :  { %658 = vmatprep.mubr.bf16.mxu0 %v1735_v45  ;;  %842 = vmatprep.mubr.bf16.mxu1 %v1800_v46 }
  0xb1   :  { %659 = vmatmul.mubr.bf16.gmra.mrb[28].mxu0 %v1737_v47  ;;  %843 = vmatmul.mubr.bf16.gmra.mrb[28].mxu1 %v1803_v48 }
  0xb2   :  { %666 = vmatprep.mubr.bf16.mxu0 %v1738_v49  ;;  %850 = vmatprep.mubr.bf16.mxu1 %v1806_v50 }
  0xb9   :  { %667 = vmatmul.mubr.bf16.gmra.mrb[32].mxu0 %v1740_v51  ;;  %851 = vmatmul.mubr.bf16.gmra.mrb[32].mxu1 %v1809_v52 }
  0xba   :  { %674 = vmatprep.mubr.bf16.mxu0 %v1741_v53  ;;  %991 = vmatprep.mubr.f32.mxu1 %v2066_v31 }
  0xc1   :  { %675 = vmatmul.mubr.bf16.gmra.mrb[36].mxu0 %v1743_v54 }
  0xc2   :  { %682 = vmatprep.mubr.bf16.mxu0 %v1744_v55 }
  0xc9   :  { %683 = vmatmul.mubr.bf16.gmra.mrb[40].mxu0 %v1746_v56 }
  0xca   :  { %690 = vmatprep.mubr.bf16.mxu0 %v1747_v57 }
  0xd1   :  { %691 = vmatmul.mubr.bf16.gmra.mrb[44].mxu0 %v1749_v58 }
  0xd2   :  { %698 = vmatprep.mubr.bf16.mxu0 %v1750_v59 }
  0xd9   :  { %699 = vmatmul.mubr.bf16.gmra.mrb[48].mxu0 %v1752_v60 }
  0xda   :  { %706 = vmatprep.mubr.bf16.mxu0 %v1753_v61 }
  0xe1   :  { %707 = vmatmul.mubr.bf16.gmra.mrb[52].mxu0 %v1755_v62 }
  0xe2   :  { %714 = vmatprep.mubr.bf16.mxu0 %v1756_v63 }
  0xe9   :  { %715 = vmatmul.mubr.bf16.gmra.mrb[56].mxu0 %v1761_v0 }
  0xea   :  { %722 = vmatprep.mubr.bf16.mxu0 %v1762_v1 }
  0xf1   :  { %723 = vmatmul.mubr.bf16.gmra.mrb[60].mxu0 %v1766_v2 }
  0xf2   :  { %730 = vmatprep.mubr.bf16.mxu0 %v1768_v3 }
  0xf9   :  { %731 = vmatmul.mubr.bf16.gmra.mrb[64].mxu0 %v1772_v4 }
  0xfa   :  { %738 = vmatprep.mubr.bf16.mxu0 %v1774_v5 }
 0x101   :  { %739 = vmatmul.mubr.bf16.gmra.mrb[68].mxu0 %v1778_v6 }
 0x102   :  { %746 = vmatprep.mubr.bf16.mxu0 %v1780_v7 }
 0x109   :  { %747 = vmatmul.mubr.bf16.gmra.mrb[72].mxu0 %v1784_v8 }
 0x10a   :  { %754 = vmatprep.mubr.bf16.mxu0 %v1786_v9 }
 0x111   :  { %755 = vmatmul.mubr.bf16.gmra.mrb[76].mxu0 %v1790_v10 }
 0x112   :  { %762 = vmatprep.mubr.bf16.mxu0 %v1792_v11 }
 0x119   :  { %763 = vmatmul.mubr.bf16.gmra.mrb[80].mxu0 %v1796_v12 }
 0x11a   :  { %770 = vmatprep.mubr.bf16.mxu0 %v1798_v13 }
 0x121   :  { %771 = vmatmul.mubr.bf16.gmra.mrb[84].mxu0 %v1802_v14 }
 0x122   :  { %778 = vmatprep.mubr.bf16.mxu0 %v1804_v15 }
 0x129   :  { %779 = vmatmul.mubr.bf16.gmra.mrb[88].mxu0 %v1808_v16 }
 0x14c   :  { %v2034_v17 = vpop.f32.mrb[0].mxu0  ;;  %v2036_v18 = vpop.f32.mrb[0].mxu1 }
 0x14d   :  { %859 = vst [vmem:[#allocation8] sm:$0xff] %v2034_v17  ;;  %v606_v19 = vpop.f32.mrb[1].mxu0  ;;  %905 = vst [vmem:[#allocation8 + $0x170] sm:$0xff] %v2036_v18  ;;  %v2042_v20 = vmul.f32 %v2036_v18, %v2036_v18  ;;  %v790_v21 = vpop.f32.mrb[1].mxu1  ;;  %v2046_v22 = vmul.f32 %v2034_v17, %v2034_v17 }
 0x14e   :  { %v2048_v23 = vpop.f32.mrb[2].mxu0  ;;  %v2050_v24 = vpop.f32.mrb[2].mxu1 }
 0x14f   :  { %2621 = vst [vmem:[#allocation15_spill] sm:$0xff] %v2042_v20  ;;  %860 = vst [vmem:[#allocation8 + $0x8] sm:$0xff] %v2048_v23  ;;  %v2057_v26 = vmul.f32 %v2048_v23, %v2048_v23  ;;  %v609_v27 = vpop.f32.mrb[3].mxu0  ;;  %v2064_v29 = vmul.f32 %v2050_v24, %v2050_v24  ;;  %v793_v30 = vpop.f32.mrb[3].mxu1 }
 0x150   :  { %906 = vst [vmem:[#allocation8 + $0x178] sm:$0xff] %v2050_v24 }
 0x151   :  { %2622 = vst [vmem:[#allocation16_spill] sm:$0xff] %v2064_v29 }
 0x154   :  { %v2073_v34 = vpop.f32.mrb[4].mxu0  ;;  %v2075_v35 = vpop.f32.mrb[4].mxu1 }
 0x155   :  { %861 = vst [vmem:[#allocation8 + $0x10] sm:$0xff] %v2073_v34  ;;  %v614_v36 = vpop.f32.mrb[5].mxu0  ;;  %907 = vst [vmem:[#allocation8 + $0x180] sm:$0xff] %v2075_v35  ;;  %v2081_v37 = vmul.f32 %v2075_v35, %v2075_v35  ;;  %v798_v38 = vpop.f32.mrb[5].mxu1  ;;  %v2085_v39 = vmul.f32 %v2073_v34, %v2073_v34 }
 0x156   :  { %v2087_v40 = vpop.f32.mrb[6].mxu0  ;;  %v2089_v41 = vpop.f32.mrb[6].mxu1 }
 0x157   :  { %2623 = vst [vmem:[#allocation17_spill] sm:$0xff] %v2081_v37  ;;  %862 = vst [vmem:[#allocation8 + $0x18] sm:$0xff] %v2087_v40  ;;  %v2096_v43 = vmul.f32 %v2087_v40, %v2087_v40  ;;  %v617_v44 = vpop.f32.mrb[7].mxu0  ;;  %v2103_v46 = vmul.f32 %v2089_v41, %v2089_v41  ;;  %v801_v47 = vpop.f32.mrb[7].mxu1 }
 0x158   :  { %908 = vst [vmem:[#allocation8 + $0x188] sm:$0xff] %v2089_v41 }
 0x159   :  { %2624 = vst [vmem:[#allocation18_spill] sm:$0xff] %v2103_v46 }
 0x15c   :  { %v2109_v50 = vpop.f32.mrb[8].mxu0  ;;  %v2111_v51 = vpop.f32.mrb[8].mxu1 }
 0x15d   :  { %863 = vst [vmem:[#allocation8 + $0x20] sm:$0xff] %v2109_v50  ;;  %v622_v52 = vpop.f32.mrb[9].mxu0  ;;  %909 = vst [vmem:[#allocation8 + $0x190] sm:$0xff] %v2111_v51  ;;  %v2117_v53 = vmul.f32 %v2111_v51, %v2111_v51  ;;  %v806_v54 = vpop.f32.mrb[9].mxu1  ;;  %v2121_v55 = vmul.f32 %v2109_v50, %v2109_v50 }
 0x15e   :  { %v2123_v56 = vpop.f32.mrb[10].mxu0  ;;  %v2125_v57 = vpop.f32.mrb[10].mxu1 }
 0x15f   :  { %2625 = vst [vmem:[#allocation19_spill] sm:$0xff] %v2117_v53  ;;  %864 = vst [vmem:[#allocation8 + $0x28] sm:$0xff] %v2123_v56  ;;  %v2132_v59 = vmul.f32 %v2123_v56, %v2123_v56  ;;  %v625_v60 = vpop.f32.mrb[11].mxu0  ;;  %v2139_v62 = vmul.f32 %v2125_v57, %v2125_v57  ;;  %v809_v63 = vpop.f32.mrb[11].mxu1 }
 0x160   :  { %910 = vst [vmem:[#allocation8 + $0x198] sm:$0xff] %v2125_v57 }
 0x161   :  { %2626 = vst [vmem:[#allocation20_spill] sm:$0xff] %v2139_v62 }
 0x164   :  { %v2145_v2 = vpop.f32.mrb[12].mxu0  ;;  %v2147_v3 = vpop.f32.mrb[12].mxu1 }
 0x165   :  { %865 = vst [vmem:[#allocation8 + $0x30] sm:$0xff] %v2145_v2  ;;  %v630_v4 = vpop.f32.mrb[13].mxu0  ;;  %911 = vst [vmem:[#allocation8 + $0x1a0] sm:$0xff] %v2147_v3  ;;  %v2153_v5 = vmul.f32 %v2147_v3, %v2147_v3  ;;  %v814_v6 = vpop.f32.mrb[13].mxu1  ;;  %v2157_v7 = vmul.f32 %v2145_v2, %v2145_v2 }
 0x166   :  { %v2159_v8 = vpop.f32.mrb[14].mxu0  ;;  %v2161_v9 = vpop.f32.mrb[14].mxu1 }
 0x167   :  { %2627 = vst [vmem:[#allocation21_spill] sm:$0xff] %v2153_v5  ;;  %866 = vst [vmem:[#allocation8 + $0x38] sm:$0xff] %v2159_v8  ;;  %v2168_v11 = vmul.f32 %v2159_v8, %v2159_v8  ;;  %v633_v12 = vpop.f32.mrb[15].mxu0  ;;  %v2175_v14 = vmul.f32 %v2161_v9, %v2161_v9  ;;  %v817_v15 = vpop.f32.mrb[15].mxu1 }
 0x168   :  { %912 = vst [vmem:[#allocation8 + $0x1a8] sm:$0xff] %v2161_v9 }
 0x169   :  { %2628 = vst [vmem:[#allocation22_spill] sm:$0xff] %v2175_v14 }
 0x16c   :  { %v2181_v21 = vpop.f32.mrb[16].mxu0  ;;  %v2183_v27 = vpop.f32.mrb[16].mxu1 }
 0x16d   :  { %867 = vst [vmem:[#allocation8 + $0x40] sm:$0xff] %v2181_v21  ;;  %v638_v30 = vpop.f32.mrb[17].mxu0  ;;  %913 = vst [vmem:[#allocation8 + $0x1b0] sm:$0xff] %v2183_v27  ;;  %v2189_v36 = vmul.f32 %v2183_v27, %v2183_v27  ;;  %v822_v38 = vpop.f32.mrb[17].mxu1  ;;  %v2193_v44 = vmul.f32 %v2181_v21, %v2181_v21 }
 0x16e   :  { %v2195_v47 = vpop.f32.mrb[18].mxu0  ;;  %v2197_v52 = vpop.f32.mrb[18].mxu1 }
 0x16f   :  { %2629 = vst [vmem:[#allocation23_spill] sm:$0xff] %v2189_v36  ;;  %868 = vst [vmem:[#allocation8 + $0x48] sm:$0xff] %v2195_v47  ;;  %v2204_v60 = vmul.f32 %v2195_v47, %v2195_v47  ;;  %v641_v63 = vpop.f32.mrb[19].mxu0  ;;  %v2211_v6 = vmul.f32 %v2197_v52, %v2197_v52  ;;  %v825_v12 = vpop.f32.mrb[19].mxu1 }
 0x170   :  { %914 = vst [vmem:[#allocation8 + $0x1b8] sm:$0xff] %v2197_v52 }
 0x171   :  { %2630 = vst [vmem:[#allocation24_spill] sm:$0xff] %v2211_v6 }
 0x174   :  { %v2217_v38 = vpop.f32.mrb[20].mxu0  ;;  %v2219_v33 = vpop.f32.mrb[20].mxu1 }
 0x175   :  { %869 = vst [vmem:[#allocation8 + $0x50] sm:$0xff] %v2217_v38  ;;  %v646_v63 = vpop.f32.mrb[21].mxu0  ;;  %915 = vst [vmem:[#allocation8 + $0x1c0] sm:$0xff] %v2219_v33  ;;  %v2225_v19 = vmul.f32 %v2219_v33, %v2219_v33  ;;  %v830_v12 = vpop.f32.mrb[21].mxu1  ;;  %v2229_v1 = vmul.f32 %v2217_v38, %v2217_v38 }
 0x176   :  { %v2231_v49 = vpop.f32.mrb[22].mxu0  ;;  %v2233_v30 = vpop.f32.mrb[22].mxu1 }
 0x177   :  { %2631 = vst [vmem:[#allocation25_spill] sm:$0xff] %v2225_v19  ;;  %870 = vst [vmem:[#allocation8 + $0x58] sm:$0xff] %v2231_v49  ;;  %v2240_v15 = vmul.f32 %v2231_v49, %v2231_v49  ;;  %v649_v16 = vpop.f32.mrb[23].mxu0  ;;  %v2247_v0 = vmul.f32 %v2233_v30, %v2233_v30  ;;  %v833_v48 = vpop.f32.mrb[23].mxu1 }
 0x178   :  { %916 = vst [vmem:[#allocation8 + $0x1c8] sm:$0xff] %v2233_v30 }
 0x179   :  { %2632 = vst [vmem:[#allocation26_spill] sm:$0xff] %v2247_v0 }
 0x17c   :  { %v2253_v4 = vpop.f32.mrb[24].mxu0  ;;  %v2255_v13 = vpop.f32.mrb[24].mxu1 }
 0x17d   :  { %871 = vst [vmem:[#allocation8 + $0x60] sm:$0xff] %v2253_v4  ;;  %v654_v16 = vpop.f32.mrb[25].mxu0  ;;  %917 = vst [vmem:[#allocation8 + $0x1d0] sm:$0xff] %v2255_v13  ;;  %v2261_v12 = vmul.f32 %v2255_v13, %v2255_v13  ;;  %v838_v48 = vpop.f32.mrb[25].mxu1  ;;  %v2265_v32 = vmul.f32 %v2253_v4, %v2253_v4 }
 0x17e   :  { %v2267_v61 = vpop.f32.mrb[26].mxu0  ;;  %v2269_v28 = vpop.f32.mrb[26].mxu1 }
 0x17f   :  { %2633 = vst [vmem:[#allocation27_spill] sm:$0xff] %v2261_v12  ;;  %872 = vst [vmem:[#allocation8 + $0x68] sm:$0xff] %v2267_v61  ;;  %v2276_v45 = vmul.f32 %v2267_v61, %v2267_v61  ;;  %v657_v63 = vpop.f32.mrb[27].mxu0  ;;  %v2283_v54 = vmul.f32 %v2269_v28, %v2269_v28  ;;  %v841_v10 = vpop.f32.mrb[27].mxu1 }
 0x180   :  { %918 = vst [vmem:[#allocation8 + $0x1d8] sm:$0xff] %v2269_v28 }
 0x181   :  { %2634 = vst [vmem:[#allocation28_spill] sm:$0xff] %v2283_v54 }
 0x184   :  { %v2289_v42 = vpop.f32.mrb[28].mxu0  ;;  %v2291_v25 = vpop.f32.mrb[28].mxu1 }
 0x185   :  { %873 = vst [vmem:[#allocation8 + $0x70] sm:$0xff] %v2289_v42  ;;  %v662_v63 = vpop.f32.mrb[29].mxu0  ;;  %919 = vst [vmem:[#allocation8 + $0x1e0] sm:$0xff] %v2291_v25  ;;  %v2297_v48 = vmul.f32 %v2291_v25, %v2291_v25  ;;  %v846_v10 = vpop.f32.mrb[29].mxu1  ;;  %v2301_v58 = vmul.f32 %v2289_v42, %v2289_v42 }
 0x186   :  { %v2303_v20 = vpop.f32.mrb[30].mxu0  ;;  %v2305_v16 = vpop.f32.mrb[30].mxu1 }
 0x187   :  { %2635 = vst [vmem:[#allocation29_spill] sm:$0xff] %v2297_v48  ;;  %2636 = vst [vmem:[#allocation30_spill] sm:$0xff] %v2301_v58  ;;  %v2312_v29 = vmul.f32 %v2303_v20, %v2303_v20  ;;  %v665_v12 = vpop.f32.mrb[31].mxu0  ;;  %v2319_v54 = vmul.f32 %v2305_v16, %v2305_v16  ;;  %v849_v19 = vpop.f32.mrb[31].mxu1 }
 0x188   :  { %874 = vst [vmem:[#allocation8 + $0x78] sm:$0xff] %v2303_v20  ;;  %920 = vst [vmem:[#allocation8 + $0x1e8] sm:$0xff] %v2305_v16 }
 0x189   :  { %2637 = vst [vmem:[#allocation31_spill] sm:$0xff] %v2319_v54 }
 0x18c   :  { %v668_v36 = vpop.f32.mrb[32].mxu0  ;;  %v2325_v6 = vpop.f32.mrb[32].mxu1 }
 0x18d   :  { %875 = vst [vmem:[#allocation8 + $0x80] sm:$0xff] %v668_v36  ;;  %v670_v12 = vpop.f32.mrb[33].mxu0  ;;  %921 = vst [vmem:[#allocation8 + $0x1f0] sm:$0xff] %v2325_v6  ;;  %v2330_v10 = vmul.f32 %v2325_v6, %v2325_v6  ;;  %v854_v5 = vpop.f32.mrb[33].mxu1  ;;  %v2332_v14 = vmul.f32 %v668_v36, %v668_v36 }
 0x18e   :  { %v671_v19 = vpop.f32.mrb[34].mxu0  ;;  %v2334_v53 = vpop.f32.mrb[34].mxu1 }
 0x18f   :  { %2638 = vst [vmem:[#allocation32_spill] sm:$0xff] %v2330_v10  ;;  %876 = vst [vmem:[#allocation8 + $0x88] sm:$0xff] %v671_v19  ;;  %v1528_v0 = vpack.c.bf16 %v671_v19, %v668_v36  ;;  %v2336_v63 = vmul.f32 %v671_v19, %v671_v19  ;;  %v673_v48 = vpop.f32.mrb[35].mxu0  ;;  %v2343_v54 = vmul.f32 %v2334_v53, %v2334_v53  ;;  %v857_v5 = vpop.f32.mrb[35].mxu1 }
 0x190   :  { %922 = vst [vmem:[#allocation8 + $0x1f8] sm:$0xff] %v2334_v53  ;;  %v2640_v48 = vpack.c.bf16 %v2048_v23, %v2034_v17  ;;  %v2641_v36 = vpack.c.bf16 %v2087_v40, %v2073_v34 }
 0x191   :  { %2639 = vst [vmem:[#allocation33_spill] sm:$0xff] %v2343_v54  ;;  %1529 = vmatprep.subr.bf16.mxu1 %v1528_v0 }
 0x192   :  { %1531 = vmatpush3.bf16.msra.mxu1 %v2640_v48 }
 0x194   :  { %v676_v19 = vpop.f32.mrb[36].mxu0 }
 0x195   :  { %877 = vst [vmem:[#allocation8 + $0x90] sm:$0xff] %v676_v19  ;;  %v678_v37 = vpop.f32.mrb[37].mxu0  ;;  %v2352_v46 = vmul.f32 %v676_v19, %v676_v19 }
 0x196   :  { %v679_v12 = vpop.f32.mrb[38].mxu0 }
 0x197   :  { %878 = vst [vmem:[#allocation8 + $0x98] sm:$0xff] %v679_v12  ;;  %v1532_v58 = vpack.c.bf16 %v679_v12, %v676_v19  ;;  %v2354_v5 = vmul.f32 %v679_v12, %v679_v12  ;;  %v681_v0 = vpop.f32.mrb[39].mxu0 }
 0x198   :  { %v2642_v0 = vpack.c.bf16 %v2123_v56, %v2109_v50 }
 0x199   :  { %1533 = vmatprep.subr.bf16.mxu1 %v1532_v58 }
 0x19a   :  { %1535 = vmatpush3.bf16.msra.mxu1 %v2641_v36 }
 0x19c   :  { %v684_v17 = vpop.f32.mrb[40].mxu0 }
 0x19d   :  { %879 = vst [vmem:[#allocation8 + $0xa0] sm:$0xff] %v684_v17  ;;  %v686_v23 = vpop.f32.mrb[41].mxu0  ;;  %v2361_v48 = vmul.f32 %v684_v17, %v684_v17 }
 0x19e   :  { %v687_v37 = vpop.f32.mrb[42].mxu0 }
 0x19f   :  { %880 = vst [vmem:[#allocation8 + $0xa8] sm:$0xff] %v687_v37  ;;  %v1536_v10 = vpack.c.bf16 %v687_v37, %v684_v17  ;;  %v2363_v19 = vmul.f32 %v687_v37, %v687_v37  ;;  %v689_v12 = vpop.f32.mrb[43].mxu0 }
 0x1a0   :  { %v2643_v12 = vpack.c.bf16 %v2159_v8, %v2145_v2 }
 0x1a1   :  { %1537 = vmatprep.subr.bf16.mxu1 %v1536_v10 }
 0x1a2   :  { %1539 = vmatpush3.bf16.msra.mxu1 %v2642_v0 }
 0x1a4   :  { %v692_v34 = vpop.f32.mrb[44].mxu0 }
 0x1a5   :  { %881 = vst [vmem:[#allocation8 + $0xb0] sm:$0xff] %v692_v34  ;;  %v694_v40 = vpop.f32.mrb[45].mxu0  ;;  %v2370_v23 = vmul.f32 %v692_v34, %v692_v34 }
 0x1a6   :  { %v695_v36 = vpop.f32.mrb[46].mxu0 }
 0x1a7   :  { %882 = vst [vmem:[#allocation8 + $0xb8] sm:$0xff] %v695_v36  ;;  %v1540_v62 = vpack.c.bf16 %v695_v36, %v692_v34  ;;  %v2372_v17 = vmul.f32 %v695_v36, %v695_v36  ;;  %v697_v37 = vpop.f32.mrb[47].mxu0 }
 0x1a8   :  { %v2644_v37 = vpack.c.bf16 %v2195_v47, %v2181_v21 }
 0x1a9   :  { %1541 = vmatprep.subr.bf16.mxu1 %v1540_v62 }
 0x1aa   :  { %1543 = vmatpush3.bf16.msra.mxu1 %v2643_v12 }
 0x1ac   :  { %v700_v50 = vpop.f32.mrb[48].mxu0 }
 0x1ad   :  { %883 = vst [vmem:[#allocation8 + $0xc0] sm:$0xff] %v700_v50  ;;  %v702_v56 = vpop.f32.mrb[49].mxu0  ;;  %v2379_v40 = vmul.f32 %v700_v50, %v700_v50 }
 0x1ae   :  { %v703_v0 = vpop.f32.mrb[50].mxu0 }
 0x1af   :  { %884 = vst [vmem:[#allocation8 + $0xc8] sm:$0xff] %v703_v0  ;;  %v1544_v58 = vpack.c.bf16 %v703_v0, %v700_v50  ;;  %v2381_v34 = vmul.f32 %v703_v0, %v703_v0  ;;  %v705_v36 = vpop.f32.mrb[51].mxu0 }
 0x1b0   :  { %v2645_v36 = vpack.c.bf16 %v2231_v49, %v2217_v38 }
 0x1b1   :  { %1545 = vmatprep.subr.bf16.mxu1 %v1544_v58 }
 0x1b2   :  { %1547 = vmatpush3.bf16.msra.mxu1 %v2644_v37 }
 0x1b4   :  { %v708_v2 = vpop.f32.mrb[52].mxu0 }
 0x1b5   :  { %885 = vst [vmem:[#allocation8 + $0xd0] sm:$0xff] %v708_v2  ;;  %v710_v8 = vpop.f32.mrb[53].mxu0  ;;  %v2388_v56 = vmul.f32 %v708_v2, %v708_v2 }
 0x1b6   :  { %v711_v12 = vpop.f32.mrb[54].mxu0 }
 0x1b7   :  { %886 = vst [vmem:[#allocation8 + $0xd8] sm:$0xff] %v711_v12  ;;  %v1548_v10 = vpack.c.bf16 %v711_v12, %v708_v2  ;;  %v2390_v50 = vmul.f32 %v711_v12, %v711_v12  ;;  %v713_v0 = vpop.f32.mrb[55].mxu0 }
 0x1b8   :  { %v2646_v0 = vpack.c.bf16 %v2267_v61, %v2253_v4  ;;  %v2415_v61 = vld [vmem:[#allocation7] sm:$0xff]  ;;  %v2648_v4 = vpack.c.bf16 %v2089_v41, %v2075_v35  ;;  %v2649_v41 = vpack.c.bf16 %v2125_v57, %v2111_v51 }
 0x1b9   :  { %1549 = vmatprep.subr.bf16.mxu1 %v1548_v10 }
 0x1ba   :  { %1551 = vmatpush3.bf16.msra.mxu1 %v2645_v36 }
 0x1bc   :  { %v716_v21 = vpop.f32.mrb[56].mxu0 }
 0x1bd   :  { %887 = vst [vmem:[#allocation8 + $0xe0] sm:$0xff] %v716_v21  ;;  %v718_v47 = vpop.f32.mrb[57].mxu0  ;;  %v2397_v8 = vmul.f32 %v716_v21, %v716_v21 }
 0x1be   :  { %v719_v37 = vpop.f32.mrb[58].mxu0 }
 0x1bf   :  { %888 = vst [vmem:[#allocation8 + $0xe8] sm:$0xff] %v719_v37  ;;  %v1552_v62 = vpack.c.bf16 %v719_v37, %v716_v21  ;;  %v2399_v2 = vmul.f32 %v719_v37, %v719_v37  ;;  %v721_v12 = vpop.f32.mrb[59].mxu0 }
 0x1c0   :  { %v2647_v12 = vpack.c.bf16 %v2303_v20, %v2289_v42 }
 0x1c1   :  { %1553 = vmatprep.subr.bf16.mxu1 %v1552_v62 }
 0x1c2   :  { %1555 = vmatpush3.bf16.msra.mxu1 %v2646_v0  ;;  %v2420_v0 = vld [vmem:[#allocation7 + $0x18] sm:$0xff] }
 0x1c4   :  { %v724_v49 = vpop.f32.mrb[60].mxu0 }
 0x1c5   :  { %889 = vst [vmem:[#allocation8 + $0xf0] sm:$0xff] %v724_v49  ;;  %v726_v38 = vpop.f32.mrb[61].mxu0  ;;  %v2406_v47 = vmul.f32 %v724_v49, %v724_v49 }
 0x1c6   :  { %v727_v36 = vpop.f32.mrb[62].mxu0 }
 0x1c7   :  { %890 = vst [vmem:[#allocation8 + $0xf8] sm:$0xff] %v727_v36  ;;  %v1556_v58 = vpack.c.bf16 %v727_v36, %v724_v49  ;;  %v2408_v21 = vmul.f32 %v727_v36, %v727_v36  ;;  %v729_v37 = vpop.f32.mrb[63].mxu0 }
 0x1c9   :  { %1557 = vmatprep.subr.bf16.mxu1 %v1556_v58 }
 0x1ca   :  { %1559 = vmatpush3.bf16.msra.mxu1 %v2647_v12 }
 0x1cb   :  { %1561 = vmatprep.subr.bf16.mxu1 %v2648_v4 }
 0x1cc   :  { %v732_v49 = vpop.f32.mrb[64].mxu0 }
 0x1cd   :  { %891 = vst [vmem:[#allocation8 + $0x100] sm:$0xff] %v732_v49  ;;  %v734_v38 = vpop.f32.mrb[65].mxu0  ;;  %992 = vmatmul.mubr.f32.vlgmr.msra.gmra.mrb[36].mxu1 %v2415_v61  ;;  %v2424_v36 = vmul.f32 %v732_v49, %v732_v49 }
 0x1ce   :  { %v735_v58 = vpop.f32.mrb[66].mxu0  ;;  %1061 = vmatprep.mubr.f32.mxu1 %v2420_v0 }
 0x1cf   :  { %892 = vst [vmem:[#allocation8 + $0x108] sm:$0xff] %v735_v58  ;;  %v1562_v20 = vpack.c.bf16 %v735_v58, %v732_v49  ;;  %v2426_v42 = vmul.f32 %v735_v58, %v735_v58  ;;  %v737_v37 = vpop.f32.mrb[67].mxu0 }
 0x1d1   :  { %1563 = vmatpush3.bf16.msra.mxu1 %v1562_v20  ;;  %v2650_v20 = vpack.c.bf16 %v2161_v9, %v2147_v3 }
 0x1d2   :  { %1565 = vmatprep.subr.bf16.mxu1 %v2649_v41 }
 0x1d4   :  { %v740_v12 = vpop.f32.mrb[68].mxu0 }
 0x1d5   :  { %893 = vst [vmem:[#allocation8 + $0x110] sm:$0xff] %v740_v12  ;;  %v742_v4 = vpop.f32.mrb[69].mxu0  ;;  %v2433_v62 = vmul.f32 %v740_v12, %v740_v12 }
 0x1d6   :  { %v743_v38 = vpop.f32.mrb[70].mxu0 }
 0x1d7   :  { %894 = vst [vmem:[#allocation8 + $0x118] sm:$0xff] %v743_v38  ;;  %v1566_v10 = vpack.c.bf16 %v743_v38, %v740_v12  ;;  %v2435_v49 = vmul.f32 %v743_v38, %v743_v38  ;;  %v745_v58 = vpop.f32.mrb[71].mxu0 }
 0x1d9   :  { %1567 = vmatpush3.bf16.msra.mxu1 %v1566_v10  ;;  %v2651_v10 = vpack.c.bf16 %v2197_v52, %v2183_v27 }
 0x1da   :  { %1569 = vmatprep.subr.bf16.mxu1 %v2650_v20 }
 0x1dc   :  { %v748_v51 = vpop.f32.mrb[72].mxu0 }
 0x1dd   :  { %895 = vst [vmem:[#allocation8 + $0x120] sm:$0xff] %v748_v51  ;;  %v750_v57 = vpop.f32.mrb[73].mxu0  ;;  %v2442_v4 = vmul.f32 %v748_v51, %v748_v51 }
 0x1de   :  { %v751_v41 = vpop.f32.mrb[74].mxu0 }
 0x1df   :  { %896 = vst [vmem:[#allocation8 + $0x128] sm:$0xff] %v751_v41  ;;  %v1570_v35 = vpack.c.bf16 %v751_v41, %v748_v51  ;;  %v2444_v12 = vmul.f32 %v751_v41, %v751_v41  ;;  %v753_v38 = vpop.f32.mrb[75].mxu0 }
 0x1e1   :  { %1571 = vmatpush3.bf16.msra.mxu1 %v1570_v35  ;;  %v2654_v35 = vpack.c.bf16 %v2233_v30, %v2219_v33 }
 0x1e2   :  { %1573 = vmatprep.subr.bf16.mxu1 %v2651_v10 }
 0x1e4   :  { %v756_v3 = vpop.f32.mrb[76].mxu0 }
 0x1e5   :  { %897 = vst [vmem:[#allocation8 + $0x130] sm:$0xff] %v756_v3  ;;  %v758_v9 = vpop.f32.mrb[77].mxu0  ;;  %v2451_v57 = vmul.f32 %v756_v3, %v756_v3 }
 0x1e6   :  { %v759_v20 = vpop.f32.mrb[78].mxu0 }
 0x1e7   :  { %2652 = vst [vmem:[#allocation34_spill] sm:$0xff] %v2451_v57  ;;  %898 = vst [vmem:[#allocation8 + $0x138] sm:$0xff] %v759_v20  ;;  %v1574_v37 = vpack.c.bf16 %v759_v20, %v756_v3  ;;  %v2453_v51 = vmul.f32 %v759_v20, %v759_v20  ;;  %v761_v41 = vpop.f32.mrb[79].mxu0 }
 0x1e9   :  { %2653 = vst [vmem:[#allocation35_spill] sm:$0xff] %v2453_v51  ;;  %1575 = vmatpush3.bf16.msra.mxu1 %v1574_v37  ;;  %v2655_v37 = vpack.c.bf16 %v2269_v28, %v2255_v13 }
 0x1ea   :  { %1577 = vmatprep.subr.bf16.mxu1 %v2654_v35 }
 0x1ec   :  { %v764_v27 = vpop.f32.mrb[80].mxu0 }
 0x1ed   :  { %899 = vst [vmem:[#allocation8 + $0x140] sm:$0xff] %v764_v27  ;;  %v766_v52 = vpop.f32.mrb[81].mxu0  ;;  %v2460_v9 = vmul.f32 %v764_v27, %v764_v27 }
 0x1ee   :  { %v767_v10 = vpop.f32.mrb[82].mxu0 }
 0x1ef   :  { %900 = vst [vmem:[#allocation8 + $0x148] sm:$0xff] %v767_v10  ;;  %v1578_v58 = vpack.c.bf16 %v767_v10, %v764_v27  ;;  %v1109_v3 = vmul.f32 %v767_v10, %v767_v10  ;;  %v769_v20 = vpop.f32.mrb[83].mxu0  ;;  %v2656_v27 = vpack.c.bf16 %v2305_v16, %v2291_v25  ;;  %v925_v25 = vld [vmem:[#allocation7 + $0x10] sm:$0xff]  ;;  %v2659_v16 = vpack.c.bf16 %v2336_v63, %v2332_v14 }
 0x1f0   :  { %v2664_v14 = vpack.c.bf16 %v2132_v59, %v2121_v55  ;;  %v2671_v55 = vpack.c.bf16 %v2399_v2, %v2397_v8  ;;  %v2672_v59 = vpack.c.bf16 %v2276_v45, %v2265_v32  ;;  %v2680_v32 = vld [vmem:[#allocation20_spill] sm:$0xff]  ;;  %v2681_v45 = vld [vmem:[#allocation19_spill] sm:$0xff]  ;;  %v2694_v2 = vld [vmem:[#allocation26_spill] sm:$0xff] }
 0x1f1   :  { %v1642_v41 = vpack.c.bf16 %v1109_v3, %v2460_v9  ;;  %1579 = vmatpush3.bf16.msra.mxu1 %v1578_v58  ;;  %v2682_v63 = vpack.c.bf16 %v2680_v32, %v2681_v45 }
 0x1f2   :  { %1581 = vmatprep.subr.bf16.mxu1 %v2655_v37 }
 0x1f4   :  { %v772_v38 = vpop.f32.mrb[84].mxu0 }
 0x1f5   :  { %901 = vst [vmem:[#allocation8 + $0x150] sm:$0xff] %v772_v38  ;;  %v774_v33 = vpop.f32.mrb[85].mxu0  ;;  %v1110_v35 = vmul.f32 %v772_v38, %v772_v38 }
 0x1f6   :  { %v775_v30 = vpop.f32.mrb[86].mxu0 }
 0x1f7   :  { %902 = vst [vmem:[#allocation8 + $0x158] sm:$0xff] %v775_v30  ;;  %v1582_v52 = vpack.c.bf16 %v775_v30, %v772_v38  ;;  %v1111_v54 = vmul.f32 %v775_v30, %v775_v30  ;;  %v777_v57 = vpop.f32.mrb[87].mxu0  ;;  %v2660_v38 = vpack.c.bf16 %v2057_v26, %v2046_v22  ;;  %v2665_v22 = vpack.c.bf16 %v2372_v17, %v2370_v23  ;;  %v2688_v17 = vld [vmem:[#allocation24_spill] sm:$0xff] }
 0x1f8   :  { %v2657_v57 = vpack.c.bf16 %v2334_v53, %v2325_v6  ;;  %v2661_v53 = vpack.c.bf16 %v2354_v5, %v2352_v46  ;;  %v2666_v26 = vpack.c.bf16 %v2168_v11, %v2157_v7  ;;  %v2670_v46 = vpack.c.bf16 %v2240_v15, %v2229_v1  ;;  %v2674_v11 = vld [vmem:[#allocation30_spill] sm:$0xff]  ;;  %v2677_v6 = vld [vmem:[#allocation17_spill] sm:$0xff]  ;;  %v2706_v30 = vld [vmem:[#allocation16_spill] sm:$0xff] }
 0x1f9   :  { %v1646_v51 = vpack.c.bf16 %v1111_v54, %v1110_v35  ;;  %1583 = vmatpush3.bf16.msra.mxu1 %v1582_v52  ;;  %v2658_v54 = vpack.c.bf16 %v2050_v24, %v2036_v18  ;;  %v2662_v18 = vpack.c.bf16 %v2096_v43, %v2085_v39  ;;  %v2663_v24 = vpack.c.bf16 %v2363_v19, %v2361_v48  ;;  %v2684_v5 = vld [vmem:[#allocation22_spill] sm:$0xff]  ;;  %v2685_v48 = vld [vmem:[#allocation21_spill] sm:$0xff]  ;;  %v2707_v35 = vld [vmem:[#allocation15_spill] sm:$0xff] }
 0x1fa   :  { %1585 = vmatprep.subr.bf16.mxu1 %v2656_v27  ;;  %v2668_v39 = vpack.c.bf16 %v2204_v60, %v2193_v44  ;;  %v2669_v43 = vpack.c.bf16 %v2390_v50, %v2388_v56  ;;  %v2673_v7 = vpack.c.bf16 %v2408_v21, %v2406_v47  ;;  %v2675_v44 = vpack.c.bf16 %v2312_v29, %v2674_v11  ;;  %v2676_v60 = vld [vmem:[#allocation18_spill] sm:$0xff]  ;;  %v2691_v56 = vld [vmem:[#allocation35_spill] sm:$0xff]  ;;  %v2695_v47 = vld [vmem:[#allocation25_spill] sm:$0xff] }
 0x1fb   :  { %v2678_v1 = vpack.c.bf16 %v2676_v60, %v2677_v6  ;;  %v2679_v15 = vpack.c.bf16 %v2426_v42, %v2424_v36  ;;  %v2683_v29 = vpack.c.bf16 %v2435_v49, %v2433_v62  ;;  %v2686_v19 = vpack.c.bf16 %v2684_v5, %v2685_v48  ;;  %v2692_v50 = vld [vmem:[#allocation34_spill] sm:$0xff]  ;;  %v2697_v62 = vld [vmem:[#allocation28_spill] sm:$0xff]  ;;  %v2700_v36 = vld [vmem:[#allocation31_spill] sm:$0xff] }
 0x1fc   :  { %v780_v58 = vpop.f32.mrb[88].mxu0  ;;  %v2687_v23 = vpack.c.bf16 %v2444_v12, %v2442_v4  ;;  %v2693_v8 = vpack.c.bf16 %v2691_v56, %v2692_v50  ;;  %v2696_v21 = vpack.c.bf16 %v2694_v2, %v2695_v47  ;;  %v2701_v42 = vld [vmem:[#allocation29_spill] sm:$0xff]  ;;  %v2704_v12 = vld [vmem:[#allocation32_spill] sm:$0xff]  ;;  %v2708_v52 = vpack.c.bf16 %v2706_v30, %v2707_v35 }
 0x1fd   :  { %903 = vst [vmem:[#allocation8 + $0x160] sm:$0xff] %v780_v58  ;;  %v782_v10 = vpop.f32.mrb[89].mxu0  ;;  %v1112_v13 = vmul.f32 %v780_v58, %v780_v58  ;;  %v2702_v49 = vpack.c.bf16 %v2700_v36, %v2701_v42  ;;  %v2703_v4 = vld [vmem:[#allocation33_spill] sm:$0xff] }
 0x1fe   :  { %v783_v28 = vpop.f32.mrb[90].mxu0  ;;  %v2705_v33 = vpack.c.bf16 %v2703_v4, %v2704_v12 }
 0x1ff   :  { %904 = vst [vmem:[#allocation8 + $0x168] sm:$0xff] %v783_v28  ;;  %v1586_v9 = vpack.c.bf16 %v783_v28, %v780_v58  ;;  %v1113_v3 = vmul.f32 %v783_v28, %v783_v28  ;;  %v785_v20 = vpop.f32.mrb[91].mxu0 }
 0x201   :  { %v1650_v37 = vpack.c.bf16 %v1113_v3, %v1112_v13  ;;  %1587 = vmatpush3.bf16.msra.mxu1 %v1586_v9 }
 0x202   :  { %1589 = vmatprep.subr.bf16.mxu1 %v2657_v57 }
 0x205   :  { %1591 = vmatpush3.bf16.msra.mxu1 %v2658_v54 }
 0x206   :  { %1593 = vmatprep.subr.bf16.mxu1 %v2659_v16 }
 0x208   :  { %1062 = vmatmul.mubr.f32.vlgmr.msra.gmra.mrb[38].mxu1 %v925_v25 }
 0x209   :  { %1595 = vmatpush3.bf16.msra.mxu1 %v2660_v38  ;;  %1196 = vmatprep.mubr.f32.mxu1 %v2066_v31  ;;  %v2667_v31 = vpack.c.bf16 %v2381_v34, %v2379_v40  ;;  %v2689_v40 = vld [vmem:[#allocation23_spill] sm:$0xff] }
 0x20a   :  { %1597 = vmatprep.subr.bf16.mxu1 %v2661_v53  ;;  %v2690_v34 = vpack.c.bf16 %v2688_v17, %v2689_v40 }
 0x20d   :  { %1599 = vmatpush3.bf16.msra.mxu1 %v2662_v18 }
 0x20e   :  { %1601 = vmatprep.subr.bf16.mxu1 %v2663_v24 }
 0x211   :  { %1603 = vmatpush3.bf16.msra.mxu1 %v2664_v14 }
 0x212   :  { %1605 = vmatprep.subr.bf16.mxu1 %v2665_v22 }
 0x215   :  { %1607 = vmatpush3.bf16.msra.mxu1 %v2666_v26 }
 0x216   :  { %1609 = vmatprep.subr.bf16.mxu1 %v2667_v31 }
 0x219   :  { %1611 = vmatpush3.bf16.msra.mxu1 %v2668_v39 }
 0x21a   :  { %1613 = vmatprep.subr.bf16.mxu1 %v2669_v43 }
 0x21d   :  { %1615 = vmatpush3.bf16.msra.mxu1 %v2670_v46 }
 0x21e   :  { %1617 = vmatprep.subr.bf16.mxu1 %v2671_v55 }
 0x221   :  { %1619 = vmatpush3.bf16.msra.mxu1 %v2672_v59 }
 0x222   :  { %1621 = vmatprep.subr.bf16.mxu1 %v2673_v7 }
 0x225   :  { %1623 = vmatpush3.bf16.msra.mxu1 %v2675_v44 }
 0x226   :  { %1625 = vmatprep.subr.bf16.mxu1 %v2678_v1 }
 0x228   :  { %1197 = vmatmul.mubr.f32.vlgmr.msra.gmra.mrb[40].mxu1 %v2415_v61  ;;  %v2698_v61 = vld [vmem:[#allocation27_spill] sm:$0xff] }
 0x229   :  { %1627 = vmatpush3.bf16.msra.mxu1 %v2679_v15  ;;  %1266 = vmatprep.mubr.f32.mxu1 %v2420_v0  ;;  %v2699_v0 = vpack.c.bf16 %v2697_v62, %v2698_v61 }
 0x22a   :  { %1629 = vmatprep.subr.bf16.mxu1 %v2682_v63 }
 0x22d   :  { %1631 = vmatpush3.bf16.msra.mxu1 %v2683_v29 }
 0x22e   :  { %1633 = vmatprep.subr.bf16.mxu1 %v2686_v19 }
 0x231   :  { %1635 = vmatpush3.bf16.msra.mxu1 %v2687_v23 }
 0x232   :  { %1637 = vmatprep.subr.bf16.mxu1 %v2690_v34 }
 0x235   :  { %1639 = vmatpush3.bf16.msra.mxu1 %v2693_v8 }
 0x236   :  { %1641 = vmatprep.subr.bf16.mxu1 %v2696_v21 }
 0x239   :  { %1643 = vmatpush3.bf16.msra.mxu1 %v1642_v41 }
 0x23a   :  { %1645 = vmatprep.subr.bf16.mxu1 %v2699_v0 }
 0x23d   :  { %1647 = vmatpush3.bf16.msra.mxu1 %v1646_v51 }
 0x23e   :  { %1649 = vmatprep.subr.bf16.mxu1 %v2702_v49 }
 0x241   :  { %1651 = vmatpush3.bf16.msra.mxu1 %v1650_v37 }
 0x242   :  { %1653 = vmatprep.subr.bf16.mxu1 %v2705_v33 }
 0x245   :  { %1655 = vmatpush3.bf16.msra.mxu1 %v2708_v52 }
 0x248   :  { %1267 = vmatmul.mubr.f32.vlgmr.msra.gmra.mrb[42].mxu1 %v925_v25 }
 0x2a0   :  { %v1420_v41 = vpop.f32.mrb[36].mxu1 }
 0x2a1   :  { %v1421_v27 = vpop.f32.mrb[37].mxu1 }
 0x2a2   :  { %v1422_v51 = vadd.f32 %v1421_v27, %v1420_v41 }
 0x2a3   :  { %1887 = shalt.err (!%p1884_p0)
}
 0x2a4   :  { %s1888_s5 = scalar_lea.hbm %s2598_s3, 8192 }
 0x2a5   :  { %p1889_p1 = scmp.ne.s32.totalorder %s2598_s3, %s1888_s5  ;;  %p1892_p2 = scmp.lt.u32.totalorder %s1888_s5, %s2598_s3 }
 0x2a7   :  { %p1894_p3 = pnand %p1892_p2, %p1889_p1 }
 0x2a9   :  { %1897 = shalt.err (!%p1894_p3)
}
 0x2aa   :  { %1285 = dma.vmem_to_hbm [thread:$0]  %s1280_s27, 8192, %s2598_s3, [#allocation4], %s1932_s1, %s1932_s1, %s1933_s13  }
 0x2ab   :  { %s1937_s12 = smov [#allocation9]  }
 0x2ac   :  { %s1291_s14 = sshll.u32 %s1937_s12, 4  ;;  %s1292_s14 = int_to_ptr.vmem [resolvable:$true] %s1291_s14 }
 0x2ad   :  { %s1898_s15 = scalar_lea.vmem %s1292_s14, 256  ;;  %p1903_p5 = scmp.lt.s32.totalorder %s1292_s14, %s1292_s14 }
 0x2ae   :  { %p1899_p4 = scmp.ne.s32.totalorder %s1292_s14, %s1898_s15  ;;  %p1904_p6 = scmp.lt.s32.totalorder %s1898_s15, %s1898_s15 }
 0x2b0   :  { %p1905_p7 = por %p1904_p6, %p1903_p5 }
 0x2b2   :  { %p1906_p8 = pnand %p1905_p7, %p1899_p4 }
 0x2db   :  { %v1455_v58 = vpop.f32.mrb[38].mxu1 }
 0x2dc   :  { %v1456_v10 = vpop.f32.mrb[39].mxu1 }
 0x2dd   :  { %v1457_v28 = vadd.f32 %v1456_v10, %v1455_v58 }
 0x2df   :  { %v1064_v13 = vadd.f32 %v1457_v28, %v1422_v51 }
 0x2e1   :  { %1067 = vst [vmem:[#allocation9] sm:$0xff] %v1064_v13 }
 0x2fb   :  { %v1490_v9 = vpop.f32.mrb[40].mxu1 }
 0x2fc   :  { %v1491_v3 = vpop.f32.mrb[41].mxu1 }
 0x2fd   :  { %v1492_v20 = vadd.f32 %v1491_v3, %v1490_v9 }
 0x31b   :  { %v1525_v37 = vpop.f32.mrb[42].mxu1 }
 0x31c   :  { %v1526_v57 = vpop.f32.mrb[43].mxu1 }
 0x31d   :  { %v1527_v54 = vadd.f32 %v1526_v57, %v1525_v37 }
 0x31f   :  { %v1269_v25 = vadd.f32 %v1527_v54, %v1492_v20 }
 0x321   :  { %1273 = vst [vmem:[#allocation9 + $0x8] sm:$0xff] %v1269_v25 }
 0x322   :  { %1909 = shalt.err (!%p1906_p8)
}
 0x323   :  { %s1910_s17 = scalar_lea.hbm %s2599_s4, 256 }
 0x324   :  { %p1911_p9 = scmp.ne.s32.totalorder %s2599_s4, %s1910_s17  ;;  %p1914_p10 = scmp.lt.u32.totalorder %s1910_s17, %s2599_s4 }
 0x326   :  { %p1916_p11 = pnand %p1914_p10, %p1911_p9 }
 0x328   :  { %1919 = shalt.err (!%p1916_p11)
}
 0x329   :  { %1297 = dma.vmem_to_hbm [thread:$0]  %s1292_s14, 256, %s2599_s4, [#allocation10], %s1932_s1, %s1932_s1, %s1933_s13  }
 0x32a   :  { %1924 = dma.done.wait [#allocation4], 8192  }
 0x32b   :  { %1925 = vsyncadd [#allocation4], 4294959104 }
 0x32c   :  { %1926 = dma.done.wait [#allocation10], 256  }
 0x32d   :  { %1927 = vsyncadd [#allocation10], 4294967040 }
 0x32e   :  { %1304 = vsyncpa [#allocation3], 1 }
 0x32f   :  { %1305 = vsyncpa [#allocation6], 1 }
 0x330   :  { %1306 = vsyncpa [#allocation4], 1 }
 0x331   :  { %1307 = vsyncpa [#allocation10], 1 }

</bundles_post_ra>
